<compile_context>
chip_gen: v7x
topology: tpu7x:2x2x1
jax: 0.10.0
libtpu: 0.0.40
codegen_flags: <defaults>
</compile_context>

<pallas_src>
import functools

import jax
import jax.numpy as jnp
from jax.experimental import pallas as pl
from jax.experimental.pallas import tpu as pltpu

H1, H2, H3 = 32, 16, 8   # hidden sizes of lstm1 / lstm2 / lstm3 (fixed by the module)
LANES = 128              # TPU lane width
SUB = 8                  # sublane tile rows


def _pad_to(n, m):
    return -(-n // m) * m


def _make_layout(input_size):
    """Static row layout of the packed parameter slab.

    Every block starts on an 8-row boundary so in-kernel static slices never cross an
    (8,128) tile boundary.
    """
    dp = _pad_to(input_size, SUB)
    blocks = [
        ("w_ih1", dp), ("w_hh1", H1), ("b1", 1),
        ("w_ih2", H1), ("w_hh2", H2), ("b2", 1),
        ("w_ih3", H2), ("w_hh3", H3), ("b3", 1),
        ("w_fc", H3), ("b_fc", 1),
    ]
    offs, r = {}, 0
    for name, rows in blocks:
        offs[name] = r
        r += _pad_to(rows, SUB)
    return offs, r, dp


def pack_params(params, input_size, future_steps):
    """Pack every weight/bias into ONE lane-padded (rows, 128) f32 slab (1 DMA instead of 11).

    The g-gate columns [2*hid, 3*hid) of w_ih / w_hh / b are pre-scaled by 2 here, once,
    off the recurrent critical path, so the kernel can use tanh(x) = 2*sigmoid(2x) - 1.
    Unused rows/lanes are zero.
    """
    del future_steps  # layout does not depend on it (w_fc lanes just stay mostly zero)
    offs, total_rows, _ = _make_layout(input_size)
    slab = jnp.zeros((total_rows, LANES), jnp.float32)

    def put(slab, name, a, hid=None):
        a = a.astype(jnp.float32)
        if hid is not None:
            a = a.at[:, 2 * hid:3 * hid].multiply(2.0)
        r, c = a.shape
        return slab.at[offs[name]:offs[name] + r, :c].set(a)

    for li, hid in ((1, H1), (2, H2), (3, H3)):
        slab = put(slab, f"w_ih{li}", params[f"w_ih{li}"], hid)
        slab = put(slab, f"w_hh{li}", params[f"w_hh{li}"], hid)
        slab = put(slab, f"b{li}", params[f"b{li}"], hid)
    slab = put(slab, "w_fc", params["w_fc"])
    slab = put(slab, "b_fc", params["b_fc"])
    return slab, offs


def medium_lstm_kernel(x_ref, p_ref, out_ref, seq1_ref, seq2_ref, *, T, Bp, Dp, offs):
    def wblk(name, rows):
        r0 = offs[name]
        return p_ref[r0:r0 + rows, :]   # static, 8-row-aligned slice of the packed slab

    def run_layer(seq2d, din, hid, li, seq_out_ref):
        # seq2d: (T*Bp, din), time-major padded batch (row index = t*Bp + b).
        w_ih = wblk(f"w_ih{li}", din)   # (din, 128); cols >= 4*hid are zero
        w_hh = wblk(f"w_hh{li}", hid)   # (hid, 128)
        b = wblk(f"b{li}", 1)           # (1, 128)

        # Input projection for EVERY timestep in one well-shaped matmul, bias folded in once.
        xproj = jnp.dot(seq2d, w_ih, preferred_element_type=jnp.float32) + b  # (T*Bp, 128)

        h = jnp.zeros((Bp, hid), jnp.float32)
        c = jnp.zeros((Bp, hid), jnp.float32)
        for t in range(T):  # T small & static -> fully unrolled serial recurrence
            # Only ONE small matmul on the serial h-dependency chain.
            gates = xproj[t * Bp:(t + 1) * Bp, :] + jnp.dot(
                h, w_hh, preferred_element_type=jnp.float32)
            # Single EUP pass over the whole lane-dense 128-wide gate slab.
            sg = jax.nn.sigmoid(gates)
            i = sg[:, 0 * hid:1 * hid]
            f = sg[:, 1 * hid:2 * hid]
            g = 2.0 * sg[:, 2 * hid:3 * hid] - 1.0  # tanh of unscaled preact (cols pre-scaled)
            o = sg[:, 3 * hid:4 * hid]
            c = f * c + i * g
            h = o * jnp.tanh(c)
            if seq_out_ref is not None:
                # Tile-aligned 8-row store into VMEM scratch (no concat / relayout later).
                seq_out_ref[t * Bp:(t + 1) * Bp, :] = h
        return h

    run_layer(x_ref[...], Dp, H1, 1, seq1_ref)
    run_layer(seq1_ref[...], H1, H2, 2, seq2_ref)
    h3 = run_layer(seq2_ref[...], H2, H3, 3, None)

    # fc on the last timestep's hidden state of lstm3; output kept 128-lane dense
    # (padded cols of w_fc / b_fc are zero), wrapper slices to (B, future_steps).
    w_fc = wblk("w_fc", H3)
    b_fc = wblk("b_fc", 1)
    out_ref[...] = jnp.dot(h3, w_fc, preferred_element_type=jnp.float32) + b_fc


def medium_lstm_forward(x, slab, offs, future_steps):
    B, T, D = x.shape
    Bp = _pad_to(B, SUB)
    Dp = _pad_to(D, SUB)

    # Layout plumbing only: pad batch to one sublane tile and go time-major 2D so every
    # per-timestep block inside the kernel is an aligned, contiguous 8-row slab.
    xpad = jnp.zeros((T, Bp, Dp), jnp.float32).at[:, :B, :D].set(
        jnp.transpose(x, (1, 0, 2)).astype(jnp.float32))
    x2d = xpad.reshape(T * Bp, Dp)

    vmem = pl.BlockSpec(memory_space=pltpu.MemorySpace.VMEM)
    kernel = functools.partial(medium_lstm_kernel, T=T, Bp=Bp, Dp=Dp, offs=offs)
    out = pl.pallas_call(
        kernel,
        out_shape=jax.ShapeDtypeStruct((Bp, LANES), jnp.float32),
        in_specs=[vmem, vmem],
        out_specs=vmem,
        scratch_shapes=[pltpu.VMEM((T * Bp, H1), jnp.float32),
                        pltpu.VMEM((T * Bp, H2), jnp.float32)],
    )(x2d, slab)
    return out[:B, :future_steps]


def init_params(key, input_size, future_steps):
    """Deterministic init mimicking PyTorch defaults: U(-1/sqrt(H), 1/sqrt(H))."""
    params = {}
    layer_dims = [(input_size, H1), (H1, H2), (H2, H3)]
    keys = jax.random.split(key, 3 * 4 + 2)
    ki = 0
    for li, (din, hid) in enumerate(layer_dims, start=1):
        k = 1.0 / jnp.sqrt(jnp.float32(hid))
        w_ih = jax.random.uniform(keys[ki], (din, 4 * hid), jnp.float32, -k, k); ki += 1
        w_hh = jax.random.uniform(keys[ki], (hid, 4 * hid), jnp.float32, -k, k); ki += 1
        b_ih = jax.random.uniform(keys[ki], (1, 4 * hid), jnp.float32, -k, k); ki += 1
        b_hh = jax.random.uniform(keys[ki], (1, 4 * hid), jnp.float32, -k, k); ki += 1
        params[f"w_ih{li}"] = w_ih
        params[f"w_hh{li}"] = w_hh
        params[f"b{li}"] = b_ih + b_hh  # biases always add inside the cell
    kf = 1.0 / jnp.sqrt(jnp.float32(H3))
    params["w_fc"] = jax.random.uniform(keys[ki], (H3, future_steps), jnp.float32, -kf, kf); ki += 1
    params["b_fc"] = jax.random.uniform(keys[ki], (1, future_steps), jnp.float32, -kf, kf)
    return params


def medium_lstm_reference(x, params):
    """Pure-JAX reference implementing the textbook PyTorch LSTM math (explicit sigmoid/tanh,
    no fused-gate trick, no padding), independent of the kernel's restructured cell."""
    B, T, _ = x.shape

    def cell(xt, h, c, w_ih, w_hh, b, hid):
        gates = xt @ w_ih + h @ w_hh + b
        i = jax.nn.sigmoid(gates[:, 0 * hid:1 * hid])
        f = jax.nn.sigmoid(gates[:, 1 * hid:2 * hid])
        g = jnp.tanh(gates[:, 2 * hid:3 * hid])
        o = jax.nn.sigmoid(gates[:, 3 * hid:4 * hid])
        c_new = f * c + i * g
        h_new = o * jnp.tanh(c_new)
        return h_new, c_new

    def run_layer(seq, w_ih, w_hh, b, hid):
        h = jnp.zeros((B, hid), jnp.float32)
        c = jnp.zeros((B, hid), jnp.float32)
        outs = []
        for t in range(T):
            h, c = cell(seq[:, t, :], h, c, w_ih, w_hh, b, hid)
            outs.append(h)
        return jnp.stack(outs, axis=1)

    s1 = run_layer(x, params["w_ih1"], params["w_hh1"], params["b1"], H1)
    s2 = run_layer(s1, params["w_ih2"], params["w_hh2"], params["b2"], H2)
    s3 = run_layer(s2, params["w_ih3"], params["w_hh3"], params["b3"], H3)
    return s3[:, -1, :] @ params["w_fc"] + params["b_fc"]


if __name__ == "__main__":
    B, T, input_size, future_steps = 2, 8, 4, 1

    key = jax.random.PRNGKey(0)
    kx, kp = jax.random.split(key)
    x = jax.random.normal(kx, (B, T, input_size), jnp.float32)
    params = init_params(kp, input_size, future_steps)

    # Parameter prep (pre-scale + packing) happens once, outside the kernel.
    slab, offs = pack_params(params, input_size, future_steps)

    out = medium_lstm_forward(x, slab, offs, future_steps)
    out = jax.block_until_ready(out)

    ref = medium_lstm_reference(x, params)
    assert out.shape == (B, future_steps)
    # Slightly loose tolerance: tanh(x) vs 2*sigmoid(2x)-1 round differently in f32.
    assert jnp.allclose(out, ref, atol=1e-4, rtol=1e-4), (out, ref)

    print("KERNEL_OK")
</pallas_src>

<mosaic_0001>
module attributes {stable_mosaic.version = 11 : i64} {
  func.func @medium_lstm_kernel(%arg0: memref<64x8xf32, #tpu.memory_space<vmem>>, %arg1: memref<152x128xf32, #tpu.memory_space<vmem>>, %arg2: memref<8x128xf32, #tpu.memory_space<vmem>>, %arg3: memref<64x32xf32, #tpu.memory_space<vmem>>, %arg4: memref<64x16xf32, #tpu.memory_space<vmem>>) attributes {dimension_semantics = [], scalar_prefetch = 0 : i64, scratch_operands = 2 : i64, tpu.core_type = #tpu.core_type<tc>} {
    %c0 = arith.constant 0 : index
    %c0_0 = arith.constant 0 : index
    %0 = vector.load %arg0[%c0, %c0_0] : memref<64x8xf32, #tpu.memory_space<vmem>>, vector<64x8xf32>
    %c0_1 = arith.constant 0 : index
    %c0_2 = arith.constant 0 : index
    %1 = vector.load %arg1[%c0_1, %c0_2] : memref<152x128xf32, #tpu.memory_space<vmem>>, vector<8x128xf32>
    %c8 = arith.constant 8 : index
    %c0_3 = arith.constant 0 : index
    %2 = vector.load %arg1[%c8, %c0_3] : memref<152x128xf32, #tpu.memory_space<vmem>>, vector<32x128xf32>
    %c40 = arith.constant 40 : index
    %c0_4 = arith.constant 0 : index
    %3 = vector.load %arg1[%c40, %c0_4] : memref<152x128xf32, #tpu.memory_space<vmem>>, vector<1x128xf32>
    %cst = arith.constant dense<0.000000e+00> : vector<64x128xf32>
    %4 = tpu.matmul %0, %1, %cst {dimension_numbers = #tpu.dot_dimension_numbers<[1], [0], [0], [1], [0, 0, 1, 1], [], []>} : vector<64x8xf32>, vector<8x128xf32>, vector<64x128xf32> -> vector<64x128xf32>
    %5 = vector.broadcast %3 : vector<1x128xf32> to vector<64x128xf32>
    %6 = arith.addf %4, %5 : vector<64x128xf32>
    %cst_5 = arith.constant 0.000000e+00 : f32
    %7 = vector.broadcast %cst_5 : f32 to vector<8x32xf32>
    %cst_6 = arith.constant 0.000000e+00 : f32
    %8 = vector.broadcast %cst_6 : f32 to vector<8x32xf32>
    %9 = vector.extract_strided_slice %6 {offsets = [0, 0], sizes = [8, 128], strides = [1, 1]} : vector<64x128xf32> to vector<8x128xf32>
    %cst_7 = arith.constant dense<0.000000e+00> : vector<8x128xf32>
    %10 = tpu.matmul %7, %2, %cst_7 {dimension_numbers = #tpu.dot_dimension_numbers<[1], [0], [0], [1], [0, 0, 1, 1], [], []>} : vector<8x32xf32>, vector<32x128xf32>, vector<8x128xf32> -> vector<8x128xf32>
    %11 = arith.addf %9, %10 : vector<8x128xf32>
    %12 = arith.negf %11 : vector<8x128xf32>
    %13 = math.exp %12 : vector<8x128xf32>
    %cst_8 = arith.constant 1.000000e+00 : f32
    %14 = vector.broadcast %cst_8 : f32 to vector<8x128xf32>
    %15 = arith.addf %14, %13 : vector<8x128xf32>
    %16 = arith.divf %14, %15 : vector<8x128xf32>
    %17 = vector.extract_strided_slice %16 {offsets = [0, 0], sizes = [8, 32], strides = [1, 1]} : vector<8x128xf32> to vector<8x32xf32>
    %18 = vector.extract_strided_slice %16 {offsets = [0, 32], sizes = [8, 32], strides = [1, 1]} : vector<8x128xf32> to vector<8x32xf32>
    %19 = vector.extract_strided_slice %16 {offsets = [0, 64], sizes = [8, 32], strides = [1, 1]} : vector<8x128xf32> to vector<8x32xf32>
    %cst_9 = arith.constant 2.000000e+00 : f32
    %20 = vector.broadcast %cst_9 : f32 to vector<8x32xf32>
    %21 = arith.mulf %20, %19 : vector<8x32xf32>
    %cst_10 = arith.constant 1.000000e+00 : f32
    %22 = vector.broadcast %cst_10 : f32 to vector<8x32xf32>
    %23 = arith.subf %21, %22 : vector<8x32xf32>
    %24 = vector.extract_strided_slice %16 {offsets = [0, 96], sizes = [8, 32], strides = [1, 1]} : vector<8x128xf32> to vector<8x32xf32>
    %25 = arith.mulf %18, %8 : vector<8x32xf32>
    %26 = arith.mulf %17, %23 : vector<8x32xf32>
    %27 = arith.addf %25, %26 : vector<8x32xf32>
    %28 = math.tanh %27 : vector<8x32xf32>
    %29 = arith.mulf %24, %28 : vector<8x32xf32>
    %c0_11 = arith.constant 0 : index
    %c0_12 = arith.constant 0 : index
    %30 = vector.load %arg3[%c0_11, %c0_12] : memref<64x32xf32, #tpu.memory_space<vmem>>, vector<8x32xf32>
    tpu.vector_store %arg3[%c0_11, %c0_12], %29 {strides = array<i32>} : memref<64x32xf32, #tpu.memory_space<vmem>>, vector<8x32xf32>,
    %31 = vector.extract_strided_slice %6 {offsets = [8, 0], sizes = [8, 128], strides = [1, 1]} : vector<64x128xf32> to vector<8x128xf32>
    %cst_13 = arith.constant dense<0.000000e+00> : vector<8x128xf32>
    %32 = tpu.matmul %29, %2, %cst_13 {dimension_numbers = #tpu.dot_dimension_numbers<[1], [0], [0], [1], [0, 0, 1, 1], [], []>} : vector<8x32xf32>, vector<32x128xf32>, vector<8x128xf32> -> vector<8x128xf32>
    %33 = arith.addf %31, %32 : vector<8x128xf32>
    %34 = arith.negf %33 : vector<8x128xf32>
    %35 = math.exp %34 : vector<8x128xf32>
    %cst_14 = arith.constant 1.000000e+00 : f32
    %36 = vector.broadcast %cst_14 : f32 to vector<8x128xf32>
    %37 = arith.addf %36, %35 : vector<8x128xf32>
    %38 = arith.divf %36, %37 : vector<8x128xf32>
    %39 = vector.extract_strided_slice %38 {offsets = [0, 0], sizes = [8, 32], strides = [1, 1]} : vector<8x128xf32> to vector<8x32xf32>
    %40 = vector.extract_strided_slice %38 {offsets = [0, 32], sizes = [8, 32], strides = [1, 1]} : vector<8x128xf32> to vector<8x32xf32>
    %41 = vector.extract_strided_slice %38 {offsets = [0, 64], sizes = [8, 32], strides = [1, 1]} : vector<8x128xf32> to vector<8x32xf32>
    %cst_15 = arith.constant 2.000000e+00 : f32
    %42 = vector.broadcast %cst_15 : f32 to vector<8x32xf32>
    %43 = arith.mulf %42, %41 : vector<8x32xf32>
    %cst_16 = arith.constant 1.000000e+00 : f32
    %44 = vector.broadcast %cst_16 : f32 to vector<8x32xf32>
    %45 = arith.subf %43, %44 : vector<8x32xf32>
    %46 = vector.extract_strided_slice %38 {offsets = [0, 96], sizes = [8, 32], strides = [1, 1]} : vector<8x128xf32> to vector<8x32xf32>
    %47 = arith.mulf %40, %27 : vector<8x32xf32>
    %48 = arith.mulf %39, %45 : vector<8x32xf32>
    %49 = arith.addf %47, %48 : vector<8x32xf32>
    %50 = math.tanh %49 : vector<8x32xf32>
    %51 = arith.mulf %46, %50 : vector<8x32xf32>
    %c8_17 = arith.constant 8 : index
    %c0_18 = arith.constant 0 : index
    %52 = vector.load %arg3[%c8_17, %c0_18] : memref<64x32xf32, #tpu.memory_space<vmem>>, vector<8x32xf32>
    tpu.vector_store %arg3[%c8_17, %c0_18], %51 {strides = array<i32>} : memref<64x32xf32, #tpu.memory_space<vmem>>, vector<8x32xf32>,
    %53 = vector.extract_strided_slice %6 {offsets = [16, 0], sizes = [8, 128], strides = [1, 1]} : vector<64x128xf32> to vector<8x128xf32>
    %cst_19 = arith.constant dense<0.000000e+00> : vector<8x128xf32>
    %54 = tpu.matmul %51, %2, %cst_19 {dimension_numbers = #tpu.dot_dimension_numbers<[1], [0], [0], [1], [0, 0, 1, 1], [], []>} : vector<8x32xf32>, vector<32x128xf32>, vector<8x128xf32> -> vector<8x128xf32>
    %55 = arith.addf %53, %54 : vector<8x128xf32>
    %56 = arith.negf %55 : vector<8x128xf32>
    %57 = math.exp %56 : vector<8x128xf32>
    %cst_20 = arith.constant 1.000000e+00 : f32
    %58 = vector.broadcast %cst_20 : f32 to vector<8x128xf32>
    %59 = arith.addf %58, %57 : vector<8x128xf32>
    %60 = arith.divf %58, %59 : vector<8x128xf32>
    %61 = vector.extract_strided_slice %60 {offsets = [0, 0], sizes = [8, 32], strides = [1, 1]} : vector<8x128xf32> to vector<8x32xf32>
    %62 = vector.extract_strided_slice %60 {offsets = [0, 32], sizes = [8, 32], strides = [1, 1]} : vector<8x128xf32> to vector<8x32xf32>
    %63 = vector.extract_strided_slice %60 {offsets = [0, 64], sizes = [8, 32], strides = [1, 1]} : vector<8x128xf32> to vector<8x32xf32>
    %cst_21 = arith.constant 2.000000e+00 : f32
    %64 = vector.broadcast %cst_21 : f32 to vector<8x32xf32>
    %65 = arith.mulf %64, %63 : vector<8x32xf32>
    %cst_22 = arith.constant 1.000000e+00 : f32
    %66 = vector.broadcast %cst_22 : f32 to vector<8x32xf32>
    %67 = arith.subf %65, %66 : vector<8x32xf32>
    %68 = vector.extract_strided_slice %60 {offsets = [0, 96], sizes = [8, 32], strides = [1, 1]} : vector<8x128xf32> to vector<8x32xf32>
    %69 = arith.mulf %62, %49 : vector<8x32xf32>
    %70 = arith.mulf %61, %67 : vector<8x32xf32>
    %71 = arith.addf %69, %70 : vector<8x32xf32>
    %72 = math.tanh %71 : vector<8x32xf32>
    %73 = arith.mulf %68, %72 : vector<8x32xf32>
    %c16 = arith.constant 16 : index
    %c0_23 = arith.constant 0 : index
    %74 = vector.load %arg3[%c16, %c0_23] : memref<64x32xf32, #tpu.memory_space<vmem>>, vector<8x32xf32>
    tpu.vector_store %arg3[%c16, %c0_23], %73 {strides = array<i32>} : memref<64x32xf32, #tpu.memory_space<vmem>>, vector<8x32xf32>,
    %75 = vector.extract_strided_slice %6 {offsets = [24, 0], sizes = [8, 128], strides = [1, 1]} : vector<64x128xf32> to vector<8x128xf32>
    %cst_24 = arith.constant dense<0.000000e+00> : vector<8x128xf32>
    %76 = tpu.matmul %73, %2, %cst_24 {dimension_numbers = #tpu.dot_dimension_numbers<[1], [0], [0], [1], [0, 0, 1, 1], [], []>} : vector<8x32xf32>, vector<32x128xf32>, vector<8x128xf32> -> vector<8x128xf32>
    %77 = arith.addf %75, %76 : vector<8x128xf32>
    %78 = arith.negf %77 : vector<8x128xf32>
    %79 = math.exp %78 : vector<8x128xf32>
    %cst_25 = arith.constant 1.000000e+00 : f32
    %80 = vector.broadcast %cst_25 : f32 to vector<8x128xf32>
    %81 = arith.addf %80, %79 : vector<8x128xf32>
    %82 = arith.divf %80, %81 : vector<8x128xf32>
    %83 = vector.extract_strided_slice %82 {offsets = [0, 0], sizes = [8, 32], strides = [1, 1]} : vector<8x128xf32> to vector<8x32xf32>
    %84 = vector.extract_strided_slice %82 {offsets = [0, 32], sizes = [8, 32], strides = [1, 1]} : vector<8x128xf32> to vector<8x32xf32>
    %85 = vector.extract_strided_slice %82 {offsets = [0, 64], sizes = [8, 32], strides = [1, 1]} : vector<8x128xf32> to vector<8x32xf32>
    %cst_26 = arith.constant 2.000000e+00 : f32
    %86 = vector.broadcast %cst_26 : f32 to vector<8x32xf32>
    %87 = arith.mulf %86, %85 : vector<8x32xf32>
    %cst_27 = arith.constant 1.000000e+00 : f32
    %88 = vector.broadcast %cst_27 : f32 to vector<8x32xf32>
    %89 = arith.subf %87, %88 : vector<8x32xf32>
    %90 = vector.extract_strided_slice %82 {offsets = [0, 96], sizes = [8, 32], strides = [1, 1]} : vector<8x128xf32> to vector<8x32xf32>
    %91 = arith.mulf %84, %71 : vector<8x32xf32>
    %92 = arith.mulf %83, %89 : vector<8x32xf32>
    %93 = arith.addf %91, %92 : vector<8x32xf32>
    %94 = math.tanh %93 : vector<8x32xf32>
    %95 = arith.mulf %90, %94 : vector<8x32xf32>
    %c24 = arith.constant 24 : index
    %c0_28 = arith.constant 0 : index
    %96 = vector.load %arg3[%c24, %c0_28] : memref<64x32xf32, #tpu.memory_space<vmem>>, vector<8x32xf32>
    tpu.vector_store %arg3[%c24, %c0_28], %95 {strides = array<i32>} : memref<64x32xf32, #tpu.memory_space<vmem>>, vector<8x32xf32>,
    %97 = vector.extract_strided_slice %6 {offsets = [32, 0], sizes = [8, 128], strides = [1, 1]} : vector<64x128xf32> to vector<8x128xf32>
    %cst_29 = arith.constant dense<0.000000e+00> : vector<8x128xf32>
    %98 = tpu.matmul %95, %2, %cst_29 {dimension_numbers = #tpu.dot_dimension_numbers<[1], [0], [0], [1], [0, 0, 1, 1], [], []>} : vector<8x32xf32>, vector<32x128xf32>, vector<8x128xf32> -> vector<8x128xf32>
    %99 = arith.addf %97, %98 : vector<8x128xf32>
    %100 = arith.negf %99 : vector<8x128xf32>
    %101 = math.exp %100 : vector<8x128xf32>
    %cst_30 = arith.constant 1.000000e+00 : f32
    %102 = vector.broadcast %cst_30 : f32 to vector<8x128xf32>
    %103 = arith.addf %102, %101 : vector<8x128xf32>
    %104 = arith.divf %102, %103 : vector<8x128xf32>
    %105 = vector.extract_strided_slice %104 {offsets = [0, 0], sizes = [8, 32], strides = [1, 1]} : vector<8x128xf32> to vector<8x32xf32>
    %106 = vector.extract_strided_slice %104 {offsets = [0, 32], sizes = [8, 32], strides = [1, 1]} : vector<8x128xf32> to vector<8x32xf32>
    %107 = vector.extract_strided_slice %104 {offsets = [0, 64], sizes = [8, 32], strides = [1, 1]} : vector<8x128xf32> to vector<8x32xf32>
    %cst_31 = arith.constant 2.000000e+00 : f32
    %108 = vector.broadcast %cst_31 : f32 to vector<8x32xf32>
    %109 = arith.mulf %108, %107 : vector<8x32xf32>
    %cst_32 = arith.constant 1.000000e+00 : f32
    %110 = vector.broadcast %cst_32 : f32 to vector<8x32xf32>
    %111 = arith.subf %109, %110 : vector<8x32xf32>
    %112 = vector.extract_strided_slice %104 {offsets = [0, 96], sizes = [8, 32], strides = [1, 1]} : vector<8x128xf32> to vector<8x32xf32>
    %113 = arith.mulf %106, %93 : vector<8x32xf32>
    %114 = arith.mulf %105, %111 : vector<8x32xf32>
    %115 = arith.addf %113, %114 : vector<8x32xf32>
    %116 = math.tanh %115 : vector<8x32xf32>
    %117 = arith.mulf %112, %116 : vector<8x32xf32>
    %c32 = arith.constant 32 : index
    %c0_33 = arith.constant 0 : index
    %118 = vector.load %arg3[%c32, %c0_33] : memref<64x32xf32, #tpu.memory_space<vmem>>, vector<8x32xf32>
    tpu.vector_store %arg3[%c32, %c0_33], %117 {strides = array<i32>} : memref<64x32xf32, #tpu.memory_space<vmem>>, vector<8x32xf32>,
    %119 = vector.extract_strided_slice %6 {offsets = [40, 0], sizes = [8, 128], strides = [1, 1]} : vector<64x128xf32> to vector<8x128xf32>
    %cst_34 = arith.constant dense<0.000000e+00> : vector<8x128xf32>
    %120 = tpu.matmul %117, %2, %cst_34 {dimension_numbers = #tpu.dot_dimension_numbers<[1], [0], [0], [1], [0, 0, 1, 1], [], []>} : vector<8x32xf32>, vector<32x128xf32>, vector<8x128xf32> -> vector<8x128xf32>
    %121 = arith.addf %119, %120 : vector<8x128xf32>
    %122 = arith.negf %121 : vector<8x128xf32>
    %123 = math.exp %122 : vector<8x128xf32>
    %cst_35 = arith.constant 1.000000e+00 : f32
    %124 = vector.broadcast %cst_35 : f32 to vector<8x128xf32>
    %125 = arith.addf %124, %123 : vector<8x128xf32>
    %126 = arith.divf %124, %125 : vector<8x128xf32>
    %127 = vector.extract_strided_slice %126 {offsets = [0, 0], sizes = [8, 32], strides = [1, 1]} : vector<8x128xf32> to vector<8x32xf32>
    %128 = vector.extract_strided_slice %126 {offsets = [0, 32], sizes = [8, 32], strides = [1, 1]} : vector<8x128xf32> to vector<8x32xf32>
    %129 = vector.extract_strided_slice %126 {offsets = [0, 64], sizes = [8, 32], strides = [1, 1]} : vector<8x128xf32> to vector<8x32xf32>
    %cst_36 = arith.constant 2.000000e+00 : f32
    %130 = vector.broadcast %cst_36 : f32 to vector<8x32xf32>
    %131 = arith.mulf %130, %129 : vector<8x32xf32>
    %cst_37 = arith.constant 1.000000e+00 : f32
    %132 = vector.broadcast %cst_37 : f32 to vector<8x32xf32>
    %133 = arith.subf %131, %132 : vector<8x32xf32>
    %134 = vector.extract_strided_slice %126 {offsets = [0, 96], sizes = [8, 32], strides = [1, 1]} : vector<8x128xf32> to vector<8x32xf32>
    %135 = arith.mulf %128, %115 : vector<8x32xf32>
    %136 = arith.mulf %127, %133 : vector<8x32xf32>
    %137 = arith.addf %135, %136 : vector<8x32xf32>
    %138 = math.tanh %137 : vector<8x32xf32>
    %139 = arith.mulf %134, %138 : vector<8x32xf32>
    %c40_38 = arith.constant 40 : index
    %c0_39 = arith.constant 0 : index
    %140 = vector.load %arg3[%c40_38, %c0_39] : memref<64x32xf32, #tpu.memory_space<vmem>>, vector<8x32xf32>
    tpu.vector_store %arg3[%c40_38, %c0_39], %139 {strides = array<i32>} : memref<64x32xf32, #tpu.memory_space<vmem>>, vector<8x32xf32>,
    %141 = vector.extract_strided_slice %6 {offsets = [48, 0], sizes = [8, 128], strides = [1, 1]} : vector<64x128xf32> to vector<8x128xf32>
    %cst_40 = arith.constant dense<0.000000e+00> : vector<8x128xf32>
    %142 = tpu.matmul %139, %2, %cst_40 {dimension_numbers = #tpu.dot_dimension_numbers<[1], [0], [0], [1], [0, 0, 1, 1], [], []>} : vector<8x32xf32>, vector<32x128xf32>, vector<8x128xf32> -> vector<8x128xf32>
    %143 = arith.addf %141, %142 : vector<8x128xf32>
    %144 = arith.negf %143 : vector<8x128xf32>
    %145 = math.exp %144 : vector<8x128xf32>
    %cst_41 = arith.constant 1.000000e+00 : f32
    %146 = vector.broadcast %cst_41 : f32 to vector<8x128xf32>
    %147 = arith.addf %146, %145 : vector<8x128xf32>
    %148 = arith.divf %146, %147 : vector<8x128xf32>
    %149 = vector.extract_strided_slice %148 {offsets = [0, 0], sizes = [8, 32], strides = [1, 1]} : vector<8x128xf32> to vector<8x32xf32>
    %150 = vector.extract_strided_slice %148 {offsets = [0, 32], sizes = [8, 32], strides = [1, 1]} : vector<8x128xf32> to vector<8x32xf32>
    %151 = vector.extract_strided_slice %148 {offsets = [0, 64], sizes = [8, 32], strides = [1, 1]} : vector<8x128xf32> to vector<8x32xf32>
    %cst_42 = arith.constant 2.000000e+00 : f32
    %152 = vector.broadcast %cst_42 : f32 to vector<8x32xf32>
    %153 = arith.mulf %152, %151 : vector<8x32xf32>
    %cst_43 = arith.constant 1.000000e+00 : f32
    %154 = vector.broadcast %cst_43 : f32 to vector<8x32xf32>
    %155 = arith.subf %153, %154 : vector<8x32xf32>
    %156 = vector.extract_strided_slice %148 {offsets = [0, 96], sizes = [8, 32], strides = [1, 1]} : vector<8x128xf32> to vector<8x32xf32>
    %157 = arith.mulf %150, %137 : vector<8x32xf32>
    %158 = arith.mulf %149, %155 : vector<8x32xf32>
    %159 = arith.addf %157, %158 : vector<8x32xf32>
    %160 = math.tanh %159 : vector<8x32xf32>
    %161 = arith.mulf %156, %160 : vector<8x32xf32>
    %c48 = arith.constant 48 : index
    %c0_44 = arith.constant 0 : index
    %162 = vector.load %arg3[%c48, %c0_44] : memref<64x32xf32, #tpu.memory_space<vmem>>, vector<8x32xf32>
    tpu.vector_store %arg3[%c48, %c0_44], %161 {strides = array<i32>} : memref<64x32xf32, #tpu.memory_space<vmem>>, vector<8x32xf32>,
    %163 = vector.extract_strided_slice %6 {offsets = [56, 0], sizes = [8, 128], strides = [1, 1]} : vector<64x128xf32> to vector<8x128xf32>
    %cst_45 = arith.constant dense<0.000000e+00> : vector<8x128xf32>
    %164 = tpu.matmul %161, %2, %cst_45 {dimension_numbers = #tpu.dot_dimension_numbers<[1], [0], [0], [1], [0, 0, 1, 1], [], []>} : vector<8x32xf32>, vector<32x128xf32>, vector<8x128xf32> -> vector<8x128xf32>
    %165 = arith.addf %163, %164 : vector<8x128xf32>
    %166 = arith.negf %165 : vector<8x128xf32>
    %167 = math.exp %166 : vector<8x128xf32>
    %cst_46 = arith.constant 1.000000e+00 : f32
    %168 = vector.broadcast %cst_46 : f32 to vector<8x128xf32>
    %169 = arith.addf %168, %167 : vector<8x128xf32>
    %170 = arith.divf %168, %169 : vector<8x128xf32>
    %171 = vector.extract_strided_slice %170 {offsets = [0, 0], sizes = [8, 32], strides = [1, 1]} : vector<8x128xf32> to vector<8x32xf32>
    %172 = vector.extract_strided_slice %170 {offsets = [0, 32], sizes = [8, 32], strides = [1, 1]} : vector<8x128xf32> to vector<8x32xf32>
    %173 = vector.extract_strided_slice %170 {offsets = [0, 64], sizes = [8, 32], strides = [1, 1]} : vector<8x128xf32> to vector<8x32xf32>
    %cst_47 = arith.constant 2.000000e+00 : f32
    %174 = vector.broadcast %cst_47 : f32 to vector<8x32xf32>
    %175 = arith.mulf %174, %173 : vector<8x32xf32>
    %cst_48 = arith.constant 1.000000e+00 : f32
    %176 = vector.broadcast %cst_48 : f32 to vector<8x32xf32>
    %177 = arith.subf %175, %176 : vector<8x32xf32>
    %178 = vector.extract_strided_slice %170 {offsets = [0, 96], sizes = [8, 32], strides = [1, 1]} : vector<8x128xf32> to vector<8x32xf32>
    %179 = arith.mulf %172, %159 : vector<8x32xf32>
    %180 = arith.mulf %171, %177 : vector<8x32xf32>
    %181 = arith.addf %179, %180 : vector<8x32xf32>
    %182 = math.tanh %181 : vector<8x32xf32>
    %183 = arith.mulf %178, %182 : vector<8x32xf32>
    %c56 = arith.constant 56 : index
    %c0_49 = arith.constant 0 : index
    %184 = vector.load %arg3[%c56, %c0_49] : memref<64x32xf32, #tpu.memory_space<vmem>>, vector<8x32xf32>
    tpu.vector_store %arg3[%c56, %c0_49], %183 {strides = array<i32>} : memref<64x32xf32, #tpu.memory_space<vmem>>, vector<8x32xf32>,
    %c0_50 = arith.constant 0 : index
    %c0_51 = arith.constant 0 : index
    %185 = vector.load %arg3[%c0_50, %c0_51] : memref<64x32xf32, #tpu.memory_space<vmem>>, vector<64x32xf32>
    %c48_52 = arith.constant 48 : index
    %c0_53 = arith.constant 0 : index
    %186 = vector.load %arg1[%c48_52, %c0_53] : memref<152x128xf32, #tpu.memory_space<vmem>>, vector<32x128xf32>
    %c80 = arith.constant 80 : index
    %c0_54 = arith.constant 0 : index
    %187 = vector.load %arg1[%c80, %c0_54] : memref<152x128xf32, #tpu.memory_space<vmem>>, vector<16x128xf32>
    %c96 = arith.constant 96 : index
    %c0_55 = arith.constant 0 : index
    %188 = vector.load %arg1[%c96, %c0_55] : memref<152x128xf32, #tpu.memory_space<vmem>>, vector<1x128xf32>
    %cst_56 = arith.constant dense<0.000000e+00> : vector<64x128xf32>
    %189 = tpu.matmul %185, %186, %cst_56 {dimension_numbers = #tpu.dot_dimension_numbers<[1], [0], [0], [1], [0, 0, 1, 1], [], []>} : vector<64x32xf32>, vector<32x128xf32>, vector<64x128xf32> -> vector<64x128xf32>
    %190 = vector.broadcast %188 : vector<1x128xf32> to vector<64x128xf32>
    %191 = arith.addf %189, %190 : vector<64x128xf32>
    %cst_57 = arith.constant 0.000000e+00 : f32
    %192 = vector.broadcast %cst_57 : f32 to vector<8x16xf32>
    %cst_58 = arith.constant 0.000000e+00 : f32
    %193 = vector.broadcast %cst_58 : f32 to vector<8x16xf32>
    %194 = vector.extract_strided_slice %191 {offsets = [0, 0], sizes = [8, 128], strides = [1, 1]} : vector<64x128xf32> to vector<8x128xf32>
    %cst_59 = arith.constant dense<0.000000e+00> : vector<8x128xf32>
    %195 = tpu.matmul %192, %187, %cst_59 {dimension_numbers = #tpu.dot_dimension_numbers<[1], [0], [0], [1], [0, 0, 1, 1], [], []>} : vector<8x16xf32>, vector<16x128xf32>, vector<8x128xf32> -> vector<8x128xf32>
    %196 = arith.addf %194, %195 : vector<8x128xf32>
    %197 = arith.negf %196 : vector<8x128xf32>
    %198 = math.exp %197 : vector<8x128xf32>
    %cst_60 = arith.constant 1.000000e+00 : f32
    %199 = vector.broadcast %cst_60 : f32 to vector<8x128xf32>
    %200 = arith.addf %199, %198 : vector<8x128xf32>
    %201 = arith.divf %199, %200 : vector<8x128xf32>
    %202 = vector.extract_strided_slice %201 {offsets = [0, 0], sizes = [8, 16], strides = [1, 1]} : vector<8x128xf32> to vector<8x16xf32>
    %203 = vector.extract_strided_slice %201 {offsets = [0, 16], sizes = [8, 16], strides = [1, 1]} : vector<8x128xf32> to vector<8x16xf32>
    %204 = vector.extract_strided_slice %201 {offsets = [0, 32], sizes = [8, 16], strides = [1, 1]} : vector<8x128xf32> to vector<8x16xf32>
    %cst_61 = arith.constant 2.000000e+00 : f32
    %205 = vector.broadcast %cst_61 : f32 to vector<8x16xf32>
    %206 = arith.mulf %205, %204 : vector<8x16xf32>
    %cst_62 = arith.constant 1.000000e+00 : f32
    %207 = vector.broadcast %cst_62 : f32 to vector<8x16xf32>
    %208 = arith.subf %206, %207 : vector<8x16xf32>
    %209 = vector.extract_strided_slice %201 {offsets = [0, 48], sizes = [8, 16], strides = [1, 1]} : vector<8x128xf32> to vector<8x16xf32>
    %210 = arith.mulf %203, %193 : vector<8x16xf32>
    %211 = arith.mulf %202, %208 : vector<8x16xf32>
    %212 = arith.addf %210, %211 : vector<8x16xf32>
    %213 = math.tanh %212 : vector<8x16xf32>
    %214 = arith.mulf %209, %213 : vector<8x16xf32>
    %c0_63 = arith.constant 0 : index
    %c0_64 = arith.constant 0 : index
    %215 = vector.load %arg4[%c0_63, %c0_64] : memref<64x16xf32, #tpu.memory_space<vmem>>, vector<8x16xf32>
    tpu.vector_store %arg4[%c0_63, %c0_64], %214 {strides = array<i32>} : memref<64x16xf32, #tpu.memory_space<vmem>>, vector<8x16xf32>,
    %216 = vector.extract_strided_slice %191 {offsets = [8, 0], sizes = [8, 128], strides = [1, 1]} : vector<64x128xf32> to vector<8x128xf32>
    %cst_65 = arith.constant dense<0.000000e+00> : vector<8x128xf32>
    %217 = tpu.matmul %214, %187, %cst_65 {dimension_numbers = #tpu.dot_dimension_numbers<[1], [0], [0], [1], [0, 0, 1, 1], [], []>} : vector<8x16xf32>, vector<16x128xf32>, vector<8x128xf32> -> vector<8x128xf32>
    %218 = arith.addf %216, %217 : vector<8x128xf32>
    %219 = arith.negf %218 : vector<8x128xf32>
    %220 = math.exp %219 : vector<8x128xf32>
    %cst_66 = arith.constant 1.000000e+00 : f32
    %221 = vector.broadcast %cst_66 : f32 to vector<8x128xf32>
    %222 = arith.addf %221, %220 : vector<8x128xf32>
    %223 = arith.divf %221, %222 : vector<8x128xf32>
    %224 = vector.extract_strided_slice %223 {offsets = [0, 0], sizes = [8, 16], strides = [1, 1]} : vector<8x128xf32> to vector<8x16xf32>
    %225 = vector.extract_strided_slice %223 {offsets = [0, 16], sizes = [8, 16], strides = [1, 1]} : vector<8x128xf32> to vector<8x16xf32>
    %226 = vector.extract_strided_slice %223 {offsets = [0, 32], sizes = [8, 16], strides = [1, 1]} : vector<8x128xf32> to vector<8x16xf32>
    %cst_67 = arith.constant 2.000000e+00 : f32
    %227 = vector.broadcast %cst_67 : f32 to vector<8x16xf32>
    %228 = arith.mulf %227, %226 : vector<8x16xf32>
    %cst_68 = arith.constant 1.000000e+00 : f32
    %229 = vector.broadcast %cst_68 : f32 to vector<8x16xf32>
    %230 = arith.subf %228, %229 : vector<8x16xf32>
    %231 = vector.extract_strided_slice %223 {offsets = [0, 48], sizes = [8, 16], strides = [1, 1]} : vector<8x128xf32> to vector<8x16xf32>
    %232 = arith.mulf %225, %212 : vector<8x16xf32>
    %233 = arith.mulf %224, %230 : vector<8x16xf32>
    %234 = arith.addf %232, %233 : vector<8x16xf32>
    %235 = math.tanh %234 : vector<8x16xf32>
    %236 = arith.mulf %231, %235 : vector<8x16xf32>
    %c8_69 = arith.constant 8 : index
    %c0_70 = arith.constant 0 : index
    %237 = vector.load %arg4[%c8_69, %c0_70] : memref<64x16xf32, #tpu.memory_space<vmem>>, vector<8x16xf32>
    tpu.vector_store %arg4[%c8_69, %c0_70], %236 {strides = array<i32>} : memref<64x16xf32, #tpu.memory_space<vmem>>, vector<8x16xf32>,
    %238 = vector.extract_strided_slice %191 {offsets = [16, 0], sizes = [8, 128], strides = [1, 1]} : vector<64x128xf32> to vector<8x128xf32>
    %cst_71 = arith.constant dense<0.000000e+00> : vector<8x128xf32>
    %239 = tpu.matmul %236, %187, %cst_71 {dimension_numbers = #tpu.dot_dimension_numbers<[1], [0], [0], [1], [0, 0, 1, 1], [], []>} : vector<8x16xf32>, vector<16x128xf32>, vector<8x128xf32> -> vector<8x128xf32>
    %240 = arith.addf %238, %239 : vector<8x128xf32>
    %241 = arith.negf %240 : vector<8x128xf32>
    %242 = math.exp %241 : vector<8x128xf32>
    %cst_72 = arith.constant 1.000000e+00 : f32
    %243 = vector.broadcast %cst_72 : f32 to vector<8x128xf32>
    %244 = arith.addf %243, %242 : vector<8x128xf32>
    %245 = arith.divf %243, %244 : vector<8x128xf32>
    %246 = vector.extract_strided_slice %245 {offsets = [0, 0], sizes = [8, 16], strides = [1, 1]} : vector<8x128xf32> to vector<8x16xf32>
    %247 = vector.extract_strided_slice %245 {offsets = [0, 16], sizes = [8, 16], strides = [1, 1]} : vector<8x128xf32> to vector<8x16xf32>
    %248 = vector.extract_strided_slice %245 {offsets = [0, 32], sizes = [8, 16], strides = [1, 1]} : vector<8x128xf32> to vector<8x16xf32>
    %cst_73 = arith.constant 2.000000e+00 : f32
    %249 = vector.broadcast %cst_73 : f32 to vector<8x16xf32>
    %250 = arith.mulf %249, %248 : vector<8x16xf32>
    %cst_74 = arith.constant 1.000000e+00 : f32
    %251 = vector.broadcast %cst_74 : f32 to vector<8x16xf32>
    %252 = arith.subf %250, %251 : vector<8x16xf32>
    %253 = vector.extract_strided_slice %245 {offsets = [0, 48], sizes = [8, 16], strides = [1, 1]} : vector<8x128xf32> to vector<8x16xf32>
    %254 = arith.mulf %247, %234 : vector<8x16xf32>
    %255 = arith.mulf %246, %252 : vector<8x16xf32>
    %256 = arith.addf %254, %255 : vector<8x16xf32>
    %257 = math.tanh %256 : vector<8x16xf32>
    %258 = arith.mulf %253, %257 : vector<8x16xf32>
    %c16_75 = arith.constant 16 : index
    %c0_76 = arith.constant 0 : index
    %259 = vector.load %arg4[%c16_75, %c0_76] : memref<64x16xf32, #tpu.memory_space<vmem>>, vector<8x16xf32>
    tpu.vector_store %arg4[%c16_75, %c0_76], %258 {strides = array<i32>} : memref<64x16xf32, #tpu.memory_space<vmem>>, vector<8x16xf32>,
    %260 = vector.extract_strided_slice %191 {offsets = [24, 0], sizes = [8, 128], strides = [1, 1]} : vector<64x128xf32> to vector<8x128xf32>
    %cst_77 = arith.constant dense<0.000000e+00> : vector<8x128xf32>
    %261 = tpu.matmul %258, %187, %cst_77 {dimension_numbers = #tpu.dot_dimension_numbers<[1], [0], [0], [1], [0, 0, 1, 1], [], []>} : vector<8x16xf32>, vector<16x128xf32>, vector<8x128xf32> -> vector<8x128xf32>
    %262 = arith.addf %260, %261 : vector<8x128xf32>
    %263 = arith.negf %262 : vector<8x128xf32>
    %264 = math.exp %263 : vector<8x128xf32>
    %cst_78 = arith.constant 1.000000e+00 : f32
    %265 = vector.broadcast %cst_78 : f32 to vector<8x128xf32>
    %266 = arith.addf %265, %264 : vector<8x128xf32>
    %267 = arith.divf %265, %266 : vector<8x128xf32>
    %268 = vector.extract_strided_slice %267 {offsets = [0, 0], sizes = [8, 16], strides = [1, 1]} : vector<8x128xf32> to vector<8x16xf32>
    %269 = vector.extract_strided_slice %267 {offsets = [0, 16], sizes = [8, 16], strides = [1, 1]} : vector<8x128xf32> to vector<8x16xf32>
    %270 = vector.extract_strided_slice %267 {offsets = [0, 32], sizes = [8, 16], strides = [1, 1]} : vector<8x128xf32> to vector<8x16xf32>
    %cst_79 = arith.constant 2.000000e+00 : f32
    %271 = vector.broadcast %cst_79 : f32 to vector<8x16xf32>
    %272 = arith.mulf %271, %270 : vector<8x16xf32>
    %cst_80 = arith.constant 1.000000e+00 : f32
    %273 = vector.broadcast %cst_80 : f32 to vector<8x16xf32>
    %274 = arith.subf %272, %273 : vector<8x16xf32>
    %275 = vector.extract_strided_slice %267 {offsets = [0, 48], sizes = [8, 16], strides = [1, 1]} : vector<8x128xf32> to vector<8x16xf32>
    %276 = arith.mulf %269, %256 : vector<8x16xf32>
    %277 = arith.mulf %268, %274 : vector<8x16xf32>
    %278 = arith.addf %276, %277 : vector<8x16xf32>
    %279 = math.tanh %278 : vector<8x16xf32>
    %280 = arith.mulf %275, %279 : vector<8x16xf32>
    %c24_81 = arith.constant 24 : index
    %c0_82 = arith.constant 0 : index
    %281 = vector.load %arg4[%c24_81, %c0_82] : memref<64x16xf32, #tpu.memory_space<vmem>>, vector<8x16xf32>
    tpu.vector_store %arg4[%c24_81, %c0_82], %280 {strides = array<i32>} : memref<64x16xf32, #tpu.memory_space<vmem>>, vector<8x16xf32>,
    %282 = vector.extract_strided_slice %191 {offsets = [32, 0], sizes = [8, 128], strides = [1, 1]} : vector<64x128xf32> to vector<8x128xf32>
    %cst_83 = arith.constant dense<0.000000e+00> : vector<8x128xf32>
    %283 = tpu.matmul %280, %187, %cst_83 {dimension_numbers = #tpu.dot_dimension_numbers<[1], [0], [0], [1], [0, 0, 1, 1], [], []>} : vector<8x16xf32>, vector<16x128xf32>, vector<8x128xf32> -> vector<8x128xf32>
    %284 = arith.addf %282, %283 : vector<8x128xf32>
    %285 = arith.negf %284 : vector<8x128xf32>
    %286 = math.exp %285 : vector<8x128xf32>
    %cst_84 = arith.constant 1.000000e+00 : f32
    %287 = vector.broadcast %cst_84 : f32 to vector<8x128xf32>
    %288 = arith.addf %287, %286 : vector<8x128xf32>
    %289 = arith.divf %287, %288 : vector<8x128xf32>
    %290 = vector.extract_strided_slice %289 {offsets = [0, 0], sizes = [8, 16], strides = [1, 1]} : vector<8x128xf32> to vector<8x16xf32>
    %291 = vector.extract_strided_slice %289 {offsets = [0, 16], sizes = [8, 16], strides = [1, 1]} : vector<8x128xf32> to vector<8x16xf32>
    %292 = vector.extract_strided_slice %289 {offsets = [0, 32], sizes = [8, 16], strides = [1, 1]} : vector<8x128xf32> to vector<8x16xf32>
    %cst_85 = arith.constant 2.000000e+00 : f32
    %293 = vector.broadcast %cst_85 : f32 to vector<8x16xf32>
    %294 = arith.mulf %293, %292 : vector<8x16xf32>
    %cst_86 = arith.constant 1.000000e+00 : f32
    %295 = vector.broadcast %cst_86 : f32 to vector<8x16xf32>
    %296 = arith.subf %294, %295 : vector<8x16xf32>
    %297 = vector.extract_strided_slice %289 {offsets = [0, 48], sizes = [8, 16], strides = [1, 1]} : vector<8x128xf32> to vector<8x16xf32>
    %298 = arith.mulf %291, %278 : vector<8x16xf32>
    %299 = arith.mulf %290, %296 : vector<8x16xf32>
    %300 = arith.addf %298, %299 : vector<8x16xf32>
    %301 = math.tanh %300 : vector<8x16xf32>
    %302 = arith.mulf %297, %301 : vector<8x16xf32>
    %c32_87 = arith.constant 32 : index
    %c0_88 = arith.constant 0 : index
    %303 = vector.load %arg4[%c32_87, %c0_88] : memref<64x16xf32, #tpu.memory_space<vmem>>, vector<8x16xf32>
    tpu.vector_store %arg4[%c32_87, %c0_88], %302 {strides = array<i32>} : memref<64x16xf32, #tpu.memory_space<vmem>>, vector<8x16xf32>,
    %304 = vector.extract_strided_slice %191 {offsets = [40, 0], sizes = [8, 128], strides = [1, 1]} : vector<64x128xf32> to vector<8x128xf32>
    %cst_89 = arith.constant dense<0.000000e+00> : vector<8x128xf32>
    %305 = tpu.matmul %302, %187, %cst_89 {dimension_numbers = #tpu.dot_dimension_numbers<[1], [0], [0], [1], [0, 0, 1, 1], [], []>} : vector<8x16xf32>, vector<16x128xf32>, vector<8x128xf32> -> vector<8x128xf32>
    %306 = arith.addf %304, %305 : vector<8x128xf32>
    %307 = arith.negf %306 : vector<8x128xf32>
    %308 = math.exp %307 : vector<8x128xf32>
    %cst_90 = arith.constant 1.000000e+00 : f32
    %309 = vector.broadcast %cst_90 : f32 to vector<8x128xf32>
    %310 = arith.addf %309, %308 : vector<8x128xf32>
    %311 = arith.divf %309, %310 : vector<8x128xf32>
    %312 = vector.extract_strided_slice %311 {offsets = [0, 0], sizes = [8, 16], strides = [1, 1]} : vector<8x128xf32> to vector<8x16xf32>
    %313 = vector.extract_strided_slice %311 {offsets = [0, 16], sizes = [8, 16], strides = [1, 1]} : vector<8x128xf32> to vector<8x16xf32>
    %314 = vector.extract_strided_slice %311 {offsets = [0, 32], sizes = [8, 16], strides = [1, 1]} : vector<8x128xf32> to vector<8x16xf32>
    %cst_91 = arith.constant 2.000000e+00 : f32
    %315 = vector.broadcast %cst_91 : f32 to vector<8x16xf32>
    %316 = arith.mulf %315, %314 : vector<8x16xf32>
    %cst_92 = arith.constant 1.000000e+00 : f32
    %317 = vector.broadcast %cst_92 : f32 to vector<8x16xf32>
    %318 = arith.subf %316, %317 : vector<8x16xf32>
    %319 = vector.extract_strided_slice %311 {offsets = [0, 48], sizes = [8, 16], strides = [1, 1]} : vector<8x128xf32> to vector<8x16xf32>
    %320 = arith.mulf %313, %300 : vector<8x16xf32>
    %321 = arith.mulf %312, %318 : vector<8x16xf32>
    %322 = arith.addf %320, %321 : vector<8x16xf32>
    %323 = math.tanh %322 : vector<8x16xf32>
    %324 = arith.mulf %319, %323 : vector<8x16xf32>
    %c40_93 = arith.constant 40 : index
    %c0_94 = arith.constant 0 : index
    %325 = vector.load %arg4[%c40_93, %c0_94] : memref<64x16xf32, #tpu.memory_space<vmem>>, vector<8x16xf32>
    tpu.vector_store %arg4[%c40_93, %c0_94], %324 {strides = array<i32>} : memref<64x16xf32, #tpu.memory_space<vmem>>, vector<8x16xf32>,
    %326 = vector.extract_strided_slice %191 {offsets = [48, 0], sizes = [8, 128], strides = [1, 1]} : vector<64x128xf32> to vector<8x128xf32>
    %cst_95 = arith.constant dense<0.000000e+00> : vector<8x128xf32>
    %327 = tpu.matmul %324, %187, %cst_95 {dimension_numbers = #tpu.dot_dimension_numbers<[1], [0], [0], [1], [0, 0, 1, 1], [], []>} : vector<8x16xf32>, vector<16x128xf32>, vector<8x128xf32> -> vector<8x128xf32>
    %328 = arith.addf %326, %327 : vector<8x128xf32>
    %329 = arith.negf %328 : vector<8x128xf32>
    %330 = math.exp %329 : vector<8x128xf32>
    %cst_96 = arith.constant 1.000000e+00 : f32
    %331 = vector.broadcast %cst_96 : f32 to vector<8x128xf32>
    %332 = arith.addf %331, %330 : vector<8x128xf32>
    %333 = arith.divf %331, %332 : vector<8x128xf32>
    %334 = vector.extract_strided_slice %333 {offsets = [0, 0], sizes = [8, 16], strides = [1, 1]} : vector<8x128xf32> to vector<8x16xf32>
    %335 = vector.extract_strided_slice %333 {offsets = [0, 16], sizes = [8, 16], strides = [1, 1]} : vector<8x128xf32> to vector<8x16xf32>
    %336 = vector.extract_strided_slice %333 {offsets = [0, 32], sizes = [8, 16], strides = [1, 1]} : vector<8x128xf32> to vector<8x16xf32>
    %cst_97 = arith.constant 2.000000e+00 : f32
    %337 = vector.broadcast %cst_97 : f32 to vector<8x16xf32>
    %338 = arith.mulf %337, %336 : vector<8x16xf32>
    %cst_98 = arith.constant 1.000000e+00 : f32
    %339 = vector.broadcast %cst_98 : f32 to vector<8x16xf32>
    %340 = arith.subf %338, %339 : vector<8x16xf32>
    %341 = vector.extract_strided_slice %333 {offsets = [0, 48], sizes = [8, 16], strides = [1, 1]} : vector<8x128xf32> to vector<8x16xf32>
    %342 = arith.mulf %335, %322 : vector<8x16xf32>
    %343 = arith.mulf %334, %340 : vector<8x16xf32>
    %344 = arith.addf %342, %343 : vector<8x16xf32>
    %345 = math.tanh %344 : vector<8x16xf32>
    %346 = arith.mulf %341, %345 : vector<8x16xf32>
    %c48_99 = arith.constant 48 : index
    %c0_100 = arith.constant 0 : index
    %347 = vector.load %arg4[%c48_99, %c0_100] : memref<64x16xf32, #tpu.memory_space<vmem>>, vector<8x16xf32>
    tpu.vector_store %arg4[%c48_99, %c0_100], %346 {strides = array<i32>} : memref<64x16xf32, #tpu.memory_space<vmem>>, vector<8x16xf32>,
    %348 = vector.extract_strided_slice %191 {offsets = [56, 0], sizes = [8, 128], strides = [1, 1]} : vector<64x128xf32> to vector<8x128xf32>
    %cst_101 = arith.constant dense<0.000000e+00> : vector<8x128xf32>
    %349 = tpu.matmul %346, %187, %cst_101 {dimension_numbers = #tpu.dot_dimension_numbers<[1], [0], [0], [1], [0, 0, 1, 1], [], []>} : vector<8x16xf32>, vector<16x128xf32>, vector<8x128xf32> -> vector<8x128xf32>
    %350 = arith.addf %348, %349 : vector<8x128xf32>
    %351 = arith.negf %350 : vector<8x128xf32>
    %352 = math.exp %351 : vector<8x128xf32>
    %cst_102 = arith.constant 1.000000e+00 : f32
    %353 = vector.broadcast %cst_102 : f32 to vector<8x128xf32>
    %354 = arith.addf %353, %352 : vector<8x128xf32>
    %355 = arith.divf %353, %354 : vector<8x128xf32>
    %356 = vector.extract_strided_slice %355 {offsets = [0, 0], sizes = [8, 16], strides = [1, 1]} : vector<8x128xf32> to vector<8x16xf32>
    %357 = vector.extract_strided_slice %355 {offsets = [0, 16], sizes = [8, 16], strides = [1, 1]} : vector<8x128xf32> to vector<8x16xf32>
    %358 = vector.extract_strided_slice %355 {offsets = [0, 32], sizes = [8, 16], strides = [1, 1]} : vector<8x128xf32> to vector<8x16xf32>
    %cst_103 = arith.constant 2.000000e+00 : f32
    %359 = vector.broadcast %cst_103 : f32 to vector<8x16xf32>
    %360 = arith.mulf %359, %358 : vector<8x16xf32>
    %cst_104 = arith.constant 1.000000e+00 : f32
    %361 = vector.broadcast %cst_104 : f32 to vector<8x16xf32>
    %362 = arith.subf %360, %361 : vector<8x16xf32>
    %363 = vector.extract_strided_slice %355 {offsets = [0, 48], sizes = [8, 16], strides = [1, 1]} : vector<8x128xf32> to vector<8x16xf32>
    %364 = arith.mulf %357, %344 : vector<8x16xf32>
    %365 = arith.mulf %356, %362 : vector<8x16xf32>
    %366 = arith.addf %364, %365 : vector<8x16xf32>
    %367 = math.tanh %366 : vector<8x16xf32>
    %368 = arith.mulf %363, %367 : vector<8x16xf32>
    %c56_105 = arith.constant 56 : index
    %c0_106 = arith.constant 0 : index
    %369 = vector.load %arg4[%c56_105, %c0_106] : memref<64x16xf32, #tpu.memory_space<vmem>>, vector<8x16xf32>
    tpu.vector_store %arg4[%c56_105, %c0_106], %368 {strides = array<i32>} : memref<64x16xf32, #tpu.memory_space<vmem>>, vector<8x16xf32>,
    %c0_107 = arith.constant 0 : index
    %c0_108 = arith.constant 0 : index
    %370 = vector.load %arg4[%c0_107, %c0_108] : memref<64x16xf32, #tpu.memory_space<vmem>>, vector<64x16xf32>
    %c104 = arith.constant 104 : index
    %c0_109 = arith.constant 0 : index
    %371 = vector.load %arg1[%c104, %c0_109] : memref<152x128xf32, #tpu.memory_space<vmem>>, vector<16x128xf32>
    %c120 = arith.constant 120 : index
    %c0_110 = arith.constant 0 : index
    %372 = vector.load %arg1[%c120, %c0_110] : memref<152x128xf32, #tpu.memory_space<vmem>>, vector<8x128xf32>
    %c128 = arith.constant 128 : index
    %c0_111 = arith.constant 0 : index
    %373 = vector.load %arg1[%c128, %c0_111] : memref<152x128xf32, #tpu.memory_space<vmem>>, vector<1x128xf32>
    %cst_112 = arith.constant dense<0.000000e+00> : vector<64x128xf32>
    %374 = tpu.matmul %370, %371, %cst_112 {dimension_numbers = #tpu.dot_dimension_numbers<[1], [0], [0], [1], [0, 0, 1, 1], [], []>} : vector<64x16xf32>, vector<16x128xf32>, vector<64x128xf32> -> vector<64x128xf32>
    %375 = vector.broadcast %373 : vector<1x128xf32> to vector<64x128xf32>
    %376 = arith.addf %374, %375 : vector<64x128xf32>
    %cst_113 = arith.constant 0.000000e+00 : f32
    %377 = vector.broadcast %cst_113 : f32 to vector<8x8xf32>
    %cst_114 = arith.constant 0.000000e+00 : f32
    %378 = vector.broadcast %cst_114 : f32 to vector<8x8xf32>
    %379 = vector.extract_strided_slice %376 {offsets = [0, 0], sizes = [8, 128], strides = [1, 1]} : vector<64x128xf32> to vector<8x128xf32>
    %cst_115 = arith.constant dense<0.000000e+00> : vector<8x128xf32>
    %380 = tpu.matmul %377, %372, %cst_115 {dimension_numbers = #tpu.dot_dimension_numbers<[1], [0], [0], [1], [0, 0, 1, 1], [], []>} : vector<8x8xf32>, vector<8x128xf32>, vector<8x128xf32> -> vector<8x128xf32>
    %381 = arith.addf %379, %380 : vector<8x128xf32>
    %382 = arith.negf %381 : vector<8x128xf32>
    %383 = math.exp %382 : vector<8x128xf32>
    %cst_116 = arith.constant 1.000000e+00 : f32
    %384 = vector.broadcast %cst_116 : f32 to vector<8x128xf32>
    %385 = arith.addf %384, %383 : vector<8x128xf32>
    %386 = arith.divf %384, %385 : vector<8x128xf32>
    %387 = vector.extract_strided_slice %386 {offsets = [0, 0], sizes = [8, 8], strides = [1, 1]} : vector<8x128xf32> to vector<8x8xf32>
    %388 = vector.extract_strided_slice %386 {offsets = [0, 8], sizes = [8, 8], strides = [1, 1]} : vector<8x128xf32> to vector<8x8xf32>
    %389 = vector.extract_strided_slice %386 {offsets = [0, 16], sizes = [8, 8], strides = [1, 1]} : vector<8x128xf32> to vector<8x8xf32>
    %cst_117 = arith.constant 2.000000e+00 : f32
    %390 = vector.broadcast %cst_117 : f32 to vector<8x8xf32>
    %391 = arith.mulf %390, %389 : vector<8x8xf32>
    %cst_118 = arith.constant 1.000000e+00 : f32
    %392 = vector.broadcast %cst_118 : f32 to vector<8x8xf32>
    %393 = arith.subf %391, %392 : vector<8x8xf32>
    %394 = vector.extract_strided_slice %386 {offsets = [0, 24], sizes = [8, 8], strides = [1, 1]} : vector<8x128xf32> to vector<8x8xf32>
    %395 = arith.mulf %388, %378 : vector<8x8xf32>
    %396 = arith.mulf %387, %393 : vector<8x8xf32>
    %397 = arith.addf %395, %396 : vector<8x8xf32>
    %398 = math.tanh %397 : vector<8x8xf32>
    %399 = arith.mulf %394, %398 : vector<8x8xf32>
    %400 = vector.extract_strided_slice %376 {offsets = [8, 0], sizes = [8, 128], strides = [1, 1]} : vector<64x128xf32> to vector<8x128xf32>
    %cst_119 = arith.constant dense<0.000000e+00> : vector<8x128xf32>
    %401 = tpu.matmul %399, %372, %cst_119 {dimension_numbers = #tpu.dot_dimension_numbers<[1], [0], [0], [1], [0, 0, 1, 1], [], []>} : vector<8x8xf32>, vector<8x128xf32>, vector<8x128xf32> -> vector<8x128xf32>
    %402 = arith.addf %400, %401 : vector<8x128xf32>
    %403 = arith.negf %402 : vector<8x128xf32>
    %404 = math.exp %403 : vector<8x128xf32>
    %cst_120 = arith.constant 1.000000e+00 : f32
    %405 = vector.broadcast %cst_120 : f32 to vector<8x128xf32>
    %406 = arith.addf %405, %404 : vector<8x128xf32>
    %407 = arith.divf %405, %406 : vector<8x128xf32>
    %408 = vector.extract_strided_slice %407 {offsets = [0, 0], sizes = [8, 8], strides = [1, 1]} : vector<8x128xf32> to vector<8x8xf32>
    %409 = vector.extract_strided_slice %407 {offsets = [0, 8], sizes = [8, 8], strides = [1, 1]} : vector<8x128xf32> to vector<8x8xf32>
    %410 = vector.extract_strided_slice %407 {offsets = [0, 16], sizes = [8, 8], strides = [1, 1]} : vector<8x128xf32> to vector<8x8xf32>
    %cst_121 = arith.constant 2.000000e+00 : f32
    %411 = vector.broadcast %cst_121 : f32 to vector<8x8xf32>
    %412 = arith.mulf %411, %410 : vector<8x8xf32>
    %cst_122 = arith.constant 1.000000e+00 : f32
    %413 = vector.broadcast %cst_122 : f32 to vector<8x8xf32>
    %414 = arith.subf %412, %413 : vector<8x8xf32>
    %415 = vector.extract_strided_slice %407 {offsets = [0, 24], sizes = [8, 8], strides = [1, 1]} : vector<8x128xf32> to vector<8x8xf32>
    %416 = arith.mulf %409, %397 : vector<8x8xf32>
    %417 = arith.mulf %408, %414 : vector<8x8xf32>
    %418 = arith.addf %416, %417 : vector<8x8xf32>
    %419 = math.tanh %418 : vector<8x8xf32>
    %420 = arith.mulf %415, %419 : vector<8x8xf32>
    %421 = vector.extract_strided_slice %376 {offsets = [16, 0], sizes = [8, 128], strides = [1, 1]} : vector<64x128xf32> to vector<8x128xf32>
    %cst_123 = arith.constant dense<0.000000e+00> : vector<8x128xf32>
    %422 = tpu.matmul %420, %372, %cst_123 {dimension_numbers = #tpu.dot_dimension_numbers<[1], [0], [0], [1], [0, 0, 1, 1], [], []>} : vector<8x8xf32>, vector<8x128xf32>, vector<8x128xf32> -> vector<8x128xf32>
    %423 = arith.addf %421, %422 : vector<8x128xf32>
    %424 = arith.negf %423 : vector<8x128xf32>
    %425 = math.exp %424 : vector<8x128xf32>
    %cst_124 = arith.constant 1.000000e+00 : f32
    %426 = vector.broadcast %cst_124 : f32 to vector<8x128xf32>
    %427 = arith.addf %426, %425 : vector<8x128xf32>
    %428 = arith.divf %426, %427 : vector<8x128xf32>
    %429 = vector.extract_strided_slice %428 {offsets = [0, 0], sizes = [8, 8], strides = [1, 1]} : vector<8x128xf32> to vector<8x8xf32>
    %430 = vector.extract_strided_slice %428 {offsets = [0, 8], sizes = [8, 8], strides = [1, 1]} : vector<8x128xf32> to vector<8x8xf32>
    %431 = vector.extract_strided_slice %428 {offsets = [0, 16], sizes = [8, 8], strides = [1, 1]} : vector<8x128xf32> to vector<8x8xf32>
    %cst_125 = arith.constant 2.000000e+00 : f32
    %432 = vector.broadcast %cst_125 : f32 to vector<8x8xf32>
    %433 = arith.mulf %432, %431 : vector<8x8xf32>
    %cst_126 = arith.constant 1.000000e+00 : f32
    %434 = vector.broadcast %cst_126 : f32 to vector<8x8xf32>
    %435 = arith.subf %433, %434 : vector<8x8xf32>
    %436 = vector.extract_strided_slice %428 {offsets = [0, 24], sizes = [8, 8], strides = [1, 1]} : vector<8x128xf32> to vector<8x8xf32>
    %437 = arith.mulf %430, %418 : vector<8x8xf32>
    %438 = arith.mulf %429, %435 : vector<8x8xf32>
    %439 = arith.addf %437, %438 : vector<8x8xf32>
    %440 = math.tanh %439 : vector<8x8xf32>
    %441 = arith.mulf %436, %440 : vector<8x8xf32>
    %442 = vector.extract_strided_slice %376 {offsets = [24, 0], sizes = [8, 128], strides = [1, 1]} : vector<64x128xf32> to vector<8x128xf32>
    %cst_127 = arith.constant dense<0.000000e+00> : vector<8x128xf32>
    %443 = tpu.matmul %441, %372, %cst_127 {dimension_numbers = #tpu.dot_dimension_numbers<[1], [0], [0], [1], [0, 0, 1, 1], [], []>} : vector<8x8xf32>, vector<8x128xf32>, vector<8x128xf32> -> vector<8x128xf32>
    %444 = arith.addf %442, %443 : vector<8x128xf32>
    %445 = arith.negf %444 : vector<8x128xf32>
    %446 = math.exp %445 : vector<8x128xf32>
    %cst_128 = arith.constant 1.000000e+00 : f32
    %447 = vector.broadcast %cst_128 : f32 to vector<8x128xf32>
    %448 = arith.addf %447, %446 : vector<8x128xf32>
    %449 = arith.divf %447, %448 : vector<8x128xf32>
    %450 = vector.extract_strided_slice %449 {offsets = [0, 0], sizes = [8, 8], strides = [1, 1]} : vector<8x128xf32> to vector<8x8xf32>
    %451 = vector.extract_strided_slice %449 {offsets = [0, 8], sizes = [8, 8], strides = [1, 1]} : vector<8x128xf32> to vector<8x8xf32>
    %452 = vector.extract_strided_slice %449 {offsets = [0, 16], sizes = [8, 8], strides = [1, 1]} : vector<8x128xf32> to vector<8x8xf32>
    %cst_129 = arith.constant 2.000000e+00 : f32
    %453 = vector.broadcast %cst_129 : f32 to vector<8x8xf32>
    %454 = arith.mulf %453, %452 : vector<8x8xf32>
    %cst_130 = arith.constant 1.000000e+00 : f32
    %455 = vector.broadcast %cst_130 : f32 to vector<8x8xf32>
    %456 = arith.subf %454, %455 : vector<8x8xf32>
    %457 = vector.extract_strided_slice %449 {offsets = [0, 24], sizes = [8, 8], strides = [1, 1]} : vector<8x128xf32> to vector<8x8xf32>
    %458 = arith.mulf %451, %439 : vector<8x8xf32>
    %459 = arith.mulf %450, %456 : vector<8x8xf32>
    %460 = arith.addf %458, %459 : vector<8x8xf32>
    %461 = math.tanh %460 : vector<8x8xf32>
    %462 = arith.mulf %457, %461 : vector<8x8xf32>
    %463 = vector.extract_strided_slice %376 {offsets = [32, 0], sizes = [8, 128], strides = [1, 1]} : vector<64x128xf32> to vector<8x128xf32>
    %cst_131 = arith.constant dense<0.000000e+00> : vector<8x128xf32>
    %464 = tpu.matmul %462, %372, %cst_131 {dimension_numbers = #tpu.dot_dimension_numbers<[1], [0], [0], [1], [0, 0, 1, 1], [], []>} : vector<8x8xf32>, vector<8x128xf32>, vector<8x128xf32> -> vector<8x128xf32>
    %465 = arith.addf %463, %464 : vector<8x128xf32>
    %466 = arith.negf %465 : vector<8x128xf32>
    %467 = math.exp %466 : vector<8x128xf32>
    %cst_132 = arith.constant 1.000000e+00 : f32
    %468 = vector.broadcast %cst_132 : f32 to vector<8x128xf32>
    %469 = arith.addf %468, %467 : vector<8x128xf32>
    %470 = arith.divf %468, %469 : vector<8x128xf32>
    %471 = vector.extract_strided_slice %470 {offsets = [0, 0], sizes = [8, 8], strides = [1, 1]} : vector<8x128xf32> to vector<8x8xf32>
    %472 = vector.extract_strided_slice %470 {offsets = [0, 8], sizes = [8, 8], strides = [1, 1]} : vector<8x128xf32> to vector<8x8xf32>
    %473 = vector.extract_strided_slice %470 {offsets = [0, 16], sizes = [8, 8], strides = [1, 1]} : vector<8x128xf32> to vector<8x8xf32>
    %cst_133 = arith.constant 2.000000e+00 : f32
    %474 = vector.broadcast %cst_133 : f32 to vector<8x8xf32>
    %475 = arith.mulf %474, %473 : vector<8x8xf32>
    %cst_134 = arith.constant 1.000000e+00 : f32
    %476 = vector.broadcast %cst_134 : f32 to vector<8x8xf32>
    %477 = arith.subf %475, %476 : vector<8x8xf32>
    %478 = vector.extract_strided_slice %470 {offsets = [0, 24], sizes = [8, 8], strides = [1, 1]} : vector<8x128xf32> to vector<8x8xf32>
    %479 = arith.mulf %472, %460 : vector<8x8xf32>
    %480 = arith.mulf %471, %477 : vector<8x8xf32>
    %481 = arith.addf %479, %480 : vector<8x8xf32>
    %482 = math.tanh %481 : vector<8x8xf32>
    %483 = arith.mulf %478, %482 : vector<8x8xf32>
    %484 = vector.extract_strided_slice %376 {offsets = [40, 0], sizes = [8, 128], strides = [1, 1]} : vector<64x128xf32> to vector<8x128xf32>
    %cst_135 = arith.constant dense<0.000000e+00> : vector<8x128xf32>
    %485 = tpu.matmul %483, %372, %cst_135 {dimension_numbers = #tpu.dot_dimension_numbers<[1], [0], [0], [1], [0, 0, 1, 1], [], []>} : vector<8x8xf32>, vector<8x128xf32>, vector<8x128xf32> -> vector<8x128xf32>
    %486 = arith.addf %484, %485 : vector<8x128xf32>
    %487 = arith.negf %486 : vector<8x128xf32>
    %488 = math.exp %487 : vector<8x128xf32>
    %cst_136 = arith.constant 1.000000e+00 : f32
    %489 = vector.broadcast %cst_136 : f32 to vector<8x128xf32>
    %490 = arith.addf %489, %488 : vector<8x128xf32>
    %491 = arith.divf %489, %490 : vector<8x128xf32>
    %492 = vector.extract_strided_slice %491 {offsets = [0, 0], sizes = [8, 8], strides = [1, 1]} : vector<8x128xf32> to vector<8x8xf32>
    %493 = vector.extract_strided_slice %491 {offsets = [0, 8], sizes = [8, 8], strides = [1, 1]} : vector<8x128xf32> to vector<8x8xf32>
    %494 = vector.extract_strided_slice %491 {offsets = [0, 16], sizes = [8, 8], strides = [1, 1]} : vector<8x128xf32> to vector<8x8xf32>
    %cst_137 = arith.constant 2.000000e+00 : f32
    %495 = vector.broadcast %cst_137 : f32 to vector<8x8xf32>
    %496 = arith.mulf %495, %494 : vector<8x8xf32>
    %cst_138 = arith.constant 1.000000e+00 : f32
    %497 = vector.broadcast %cst_138 : f32 to vector<8x8xf32>
    %498 = arith.subf %496, %497 : vector<8x8xf32>
    %499 = vector.extract_strided_slice %491 {offsets = [0, 24], sizes = [8, 8], strides = [1, 1]} : vector<8x128xf32> to vector<8x8xf32>
    %500 = arith.mulf %493, %481 : vector<8x8xf32>
    %501 = arith.mulf %492, %498 : vector<8x8xf32>
    %502 = arith.addf %500, %501 : vector<8x8xf32>
    %503 = math.tanh %502 : vector<8x8xf32>
    %504 = arith.mulf %499, %503 : vector<8x8xf32>
    %505 = vector.extract_strided_slice %376 {offsets = [48, 0], sizes = [8, 128], strides = [1, 1]} : vector<64x128xf32> to vector<8x128xf32>
    %cst_139 = arith.constant dense<0.000000e+00> : vector<8x128xf32>
    %506 = tpu.matmul %504, %372, %cst_139 {dimension_numbers = #tpu.dot_dimension_numbers<[1], [0], [0], [1], [0, 0, 1, 1], [], []>} : vector<8x8xf32>, vector<8x128xf32>, vector<8x128xf32> -> vector<8x128xf32>
    %507 = arith.addf %505, %506 : vector<8x128xf32>
    %508 = arith.negf %507 : vector<8x128xf32>
    %509 = math.exp %508 : vector<8x128xf32>
    %cst_140 = arith.constant 1.000000e+00 : f32
    %510 = vector.broadcast %cst_140 : f32 to vector<8x128xf32>
    %511 = arith.addf %510, %509 : vector<8x128xf32>
    %512 = arith.divf %510, %511 : vector<8x128xf32>
    %513 = vector.extract_strided_slice %512 {offsets = [0, 0], sizes = [8, 8], strides = [1, 1]} : vector<8x128xf32> to vector<8x8xf32>
    %514 = vector.extract_strided_slice %512 {offsets = [0, 8], sizes = [8, 8], strides = [1, 1]} : vector<8x128xf32> to vector<8x8xf32>
    %515 = vector.extract_strided_slice %512 {offsets = [0, 16], sizes = [8, 8], strides = [1, 1]} : vector<8x128xf32> to vector<8x8xf32>
    %cst_141 = arith.constant 2.000000e+00 : f32
    %516 = vector.broadcast %cst_141 : f32 to vector<8x8xf32>
    %517 = arith.mulf %516, %515 : vector<8x8xf32>
    %cst_142 = arith.constant 1.000000e+00 : f32
    %518 = vector.broadcast %cst_142 : f32 to vector<8x8xf32>
    %519 = arith.subf %517, %518 : vector<8x8xf32>
    %520 = vector.extract_strided_slice %512 {offsets = [0, 24], sizes = [8, 8], strides = [1, 1]} : vector<8x128xf32> to vector<8x8xf32>
    %521 = arith.mulf %514, %502 : vector<8x8xf32>
    %522 = arith.mulf %513, %519 : vector<8x8xf32>
    %523 = arith.addf %521, %522 : vector<8x8xf32>
    %524 = math.tanh %523 : vector<8x8xf32>
    %525 = arith.mulf %520, %524 : vector<8x8xf32>
    %526 = vector.extract_strided_slice %376 {offsets = [56, 0], sizes = [8, 128], strides = [1, 1]} : vector<64x128xf32> to vector<8x128xf32>
    %cst_143 = arith.constant dense<0.000000e+00> : vector<8x128xf32>
    %527 = tpu.matmul %525, %372, %cst_143 {dimension_numbers = #tpu.dot_dimension_numbers<[1], [0], [0], [1], [0, 0, 1, 1], [], []>} : vector<8x8xf32>, vector<8x128xf32>, vector<8x128xf32> -> vector<8x128xf32>
    %528 = arith.addf %526, %527 : vector<8x128xf32>
    %529 = arith.negf %528 : vector<8x128xf32>
    %530 = math.exp %529 : vector<8x128xf32>
    %cst_144 = arith.constant 1.000000e+00 : f32
    %531 = vector.broadcast %cst_144 : f32 to vector<8x128xf32>
    %532 = arith.addf %531, %530 : vector<8x128xf32>
    %533 = arith.divf %531, %532 : vector<8x128xf32>
    %534 = vector.extract_strided_slice %533 {offsets = [0, 0], sizes = [8, 8], strides = [1, 1]} : vector<8x128xf32> to vector<8x8xf32>
    %535 = vector.extract_strided_slice %533 {offsets = [0, 8], sizes = [8, 8], strides = [1, 1]} : vector<8x128xf32> to vector<8x8xf32>
    %536 = vector.extract_strided_slice %533 {offsets = [0, 16], sizes = [8, 8], strides = [1, 1]} : vector<8x128xf32> to vector<8x8xf32>
    %cst_145 = arith.constant 2.000000e+00 : f32
    %537 = vector.broadcast %cst_145 : f32 to vector<8x8xf32>
    %538 = arith.mulf %537, %536 : vector<8x8xf32>
    %cst_146 = arith.constant 1.000000e+00 : f32
    %539 = vector.broadcast %cst_146 : f32 to vector<8x8xf32>
    %540 = arith.subf %538, %539 : vector<8x8xf32>
    %541 = vector.extract_strided_slice %533 {offsets = [0, 24], sizes = [8, 8], strides = [1, 1]} : vector<8x128xf32> to vector<8x8xf32>
    %542 = arith.mulf %535, %523 : vector<8x8xf32>
    %543 = arith.mulf %534, %540 : vector<8x8xf32>
    %544 = arith.addf %542, %543 : vector<8x8xf32>
    %545 = math.tanh %544 : vector<8x8xf32>
    %546 = arith.mulf %541, %545 : vector<8x8xf32>
    %c136 = arith.constant 136 : index
    %c0_147 = arith.constant 0 : index
    %547 = vector.load %arg1[%c136, %c0_147] : memref<152x128xf32, #tpu.memory_space<vmem>>, vector<8x128xf32>
    %c144 = arith.constant 144 : index
    %c0_148 = arith.constant 0 : index
    %548 = vector.load %arg1[%c144, %c0_148] : memref<152x128xf32, #tpu.memory_space<vmem>>, vector<1x128xf32>
    %cst_149 = arith.constant dense<0.000000e+00> : vector<8x128xf32>
    %549 = tpu.matmul %546, %547, %cst_149 {dimension_numbers = #tpu.dot_dimension_numbers<[1], [0], [0], [1], [0, 0, 1, 1], [], []>} : vector<8x8xf32>, vector<8x128xf32>, vector<8x128xf32> -> vector<8x128xf32>
    %550 = vector.broadcast %548 : vector<1x128xf32> to vector<8x128xf32>
    %551 = arith.addf %549, %550 : vector<8x128xf32>
    %c0_150 = arith.constant 0 : index
    %c0_151 = arith.constant 0 : index
    %552 = vector.load %arg2[%c0_150, %c0_151] : memref<8x128xf32, #tpu.memory_space<vmem>>, vector<8x128xf32>
    tpu.vector_store %arg2[%c0_150, %c0_151], %551 {strides = array<i32>} : memref<8x128xf32, #tpu.memory_space<vmem>>, vector<8x128xf32>,
    return
  }
}

</mosaic_0001>

<bundles_post_ra>
// kernel: tpu_custom_call.1
= control target key start
LH: loop header
LB: loop body
LE: loop exit
PB: predicated region body
PF: predicated region fallthrough
CT: control target
= control target key end

     0   :  { %7 = vsyncpa [#allocation5], 0  ;;  %s4220_s0 = inlined_call_operand.vmem [shape: f32[64,8], index: 0, kind: input, shape index: {}]   ;;  %s4221_s1 = inlined_call_operand.hbm [shape: f32[152,128], index: 1, kind: input, shape index: {}]   ;;  %s4222_s2 = inlined_call_operand.hbm [shape: f32[8,128], index: 2, kind: output, shape index: {}]  }
   0x1   :  { %8 = vsyncpa [#allocation6], 0  ;;  %s3760_s9 = smov [#allocation4]   ;;  %s3712_s13 = scalar_lea.hbm %s4221_s1, 2432 }
   0x2   :  { %s16_s10 = sshll.u32 %s3760_s9, 4  ;;  %p3713_p0 = scmp.ne.s32.totalorder %s4221_s1, %s3712_s13  ;;  %s17_s10 = int_to_ptr.vmem [resolvable:$true] %s16_s10 }
   0x3   :  { %p3716_p1 = scmp.lt.u32.totalorder %s3712_s13, %s4221_s1 }
   0x5   :  { %p3718_p2 = pnand %p3716_p1, %p3713_p0 }
   0x7   :  { %3721 = shalt.err (!%p3718_p2)
}
   0x8   :  { %s3722_s18 = scalar_lea.vmem %s17_s10, 2432  ;;  %p3727_p4 = scmp.lt.s32.totalorder %s17_s10, %s17_s10 }
   0x9   :  { %p3723_p3 = scmp.ne.s32.totalorder %s17_s10, %s3722_s18  ;;  %p3728_p5 = scmp.lt.s32.totalorder %s3722_s18, %s3722_s18 }
   0xb   :  { %p3729_p6 = por %p3728_p5, %p3727_p4 }
   0xd   :  { %p3730_p7 = pnand %p3729_p6, %p3723_p3 }
   0xf   :  { %3733 = shalt.err (!%p3730_p7)
}
  0x10   :  { %s3761_s19 = smov 128   ;;  %s3762_s20 = smov 8  }
  0x11   :  { %22 = dma.hbm_to_vmem [thread:$0]  %s4221_s1, 2432, %s17_s10, [#allocation5], %s3761_s19, %s3761_s19, %s3762_s20  }
  0x12   :  { %3756 = dma.done.wait [#allocation5], 2432  }
  0x13   :  { %3757 = vsyncadd [#allocation5], 4294964864  ;;  %v3763_v0 = vmov 0.0|0.0   ;;  %vm3764_vm0 = vmmov 0   ;;  %v3765_v1 = vmov 0.0   ;;  %vm44_vm1 = vcmask 64512  }
  0x14   :  { %3470 = vmatprep.subr.bf16.mxu1 %v3763_v0  ;;  %3253 = vmatprep.mubr.msk.f32.mxu1 %vm3764_vm0, %v3765_v1  ;;  %v35_v2 = vld [vmem:[#allocation4 + $0x8] sm:$0xff]  ;;  %v36_v3 = vld [vmem:[#allocation4 + $0x10] sm:$0xff]  ;;  %v34_v4 = vld [vmem:[#allocation4] sm:$0xff]  ;;  %s3766_s26 = smov 64   ;;  %s3767_s27 = smov 32   ;;  %vm174_vm2 = vcmask 261120  }
  0x15   :  { %v3805_v5 = vpack.c.bf16 %v36_v3, %v35_v2  ;;  %3231 = vmatprep.subr.mxu0 %v34_v4  ;;  %v26_v6 = vld [vmem:[%s4220_s0] sm:$0xff]  ;;  %v27_v7 = vld [vmem:[%s4220_s0 + $0x8] sm:$0xff]  ;;  %v37_v8 = vld [vmem:[#allocation4 + $0x18] sm:$0xff]  ;;  %s3769_s12 = smov 16   ;;  %s3770_s13 = smov 80   ;;  %vm1148_vm3 = vcmask 130048  }
  0x16   :  { %3232 = vmatpush3.msra.mxu0 %v34_v4  ;;  %3233 = vmatprep.mubr.msk.f32.mxu0 %vm44_vm1, %v26_v6  ;;  %v38_v9 = vld [vmem:[#allocation4 + $0x20] sm:$0xff]  ;;  %v3833_v12 = vld [vmem:[#allocation4 + $0x28] ss:$0 sm:$0xff]  ;;  %v28_v48 = vld [vmem:[%s4220_s0 + $0x10] sm:$0xff]  ;;  %s3771_s14 = smov 112   ;;  %s3772_s15 = smov 104  }
  0x17   :  { %3472 = vmatpush3.bf16.msra.mxu1 %v3805_v5  ;;  %3234 = vmatmul.mubr.msk.f32.vlgmr.msra.gmra.mrb[0].mxu0 %vm44_vm1, %v27_v7  ;;  %v3816_v10 = vpack.c.bf16 %v38_v9, %v37_v8  ;;  %v29_v49 = vld [vmem:[%s4220_s0 + $0x18] sm:$0xff]  ;;  %v30_v50 = vld [vmem:[%s4220_s0 + $0x20] sm:$0xff]  ;;  %v31_v51 = vld [vmem:[%s4220_s0 + $0x28] sm:$0xff]  ;;  %s3773_s16 = smov [#allocation7]  }
  0x18   :  { %3473 = vmatprep.subr.bf16.mxu1 %v3763_v0  ;;  %3482 = vmatprep.subr.bf16.mxu0 %v3763_v0  ;;  %v32_v52 = vld [vmem:[%s4220_s0 + $0x30] sm:$0xff]  ;;  %v33_v53 = vld [vmem:[%s4220_s0 + $0x38] sm:$0xff]  ;;  %s3768_s0 = smov 96   ;;  %s3011_s17 = sshll.u32 %s3773_s16, 4  ;;  %s3012_s17 = int_to_ptr.vmem [resolvable:$true] %s3011_s17 }
  0x19   :  { %3484 = vmatpush3.bf16.msra.mxu0 %v3805_v5  ;;  %3236 = vmatprep.mubr.msk.f32.mxu0 %vm44_vm1, %v28_v48  ;;  %s3734_s18 = scalar_lea.vmem %s3012_s17, 128  ;;  %p3739_p9 = scmp.lt.s32.totalorder %s3012_s17, %s3012_s17 }
  0x1a   :  { %3485 = vmatprep.subr.bf16.mxu0 %v3763_v0  ;;  %p3735_p8 = scmp.ne.s32.totalorder %s3012_s17, %s3734_s18  ;;  %p3740_p10 = scmp.lt.s32.totalorder %s3734_s18, %s3734_s18 }
  0x1b   :  { %3475 = vmatpush3.bf16.msra.mxu1 %v3816_v10  ;;  %3237 = vmatmul.mubr.msk.f32.gmra.mrb[2].mxu0 %vm44_vm1, %v29_v49 }
  0x1c   :  { %3476 = vmatprep.subr.bf16.mxu1 %v3763_v0  ;;  %3239 = vmatprep.mubr.msk.f32.mxu0 %vm44_vm1, %v30_v50  ;;  %p3741_p11 = por %p3740_p10, %p3739_p9 }
  0x1d   :  { %3487 = vmatpush3.bf16.msra.mxu0 %v3816_v10 }
  0x1e   :  { %3254 = vmatmul.mubr.f32.vlgmr.msra.gmra.mrb[0].mxu1 %v3765_v1  ;;  %3494 = vmatprep.subr.bf16.mxu0 %v3763_v0  ;;  %p3742_p12 = pnand %p3741_p11, %p3735_p8 }
  0x1f   :  { %3478 = vmatpush3.bf16.msra.mxu1 %v3805_v5  ;;  %3264 = vmatprep.mubr.msk.f32.mxu1 %vm3764_vm0, %v3765_v1 }
  0x20   :  { %3479 = vmatprep.subr.bf16.mxu1 %v3763_v0  ;;  %3240 = vmatmul.mubr.msk.f32.gmra.mrb[4].mxu0 %vm44_vm1, %v31_v51 }
  0x21   :  { %3242 = vmatprep.mubr.msk.f32.mxu0 %vm44_vm1, %v32_v52 }
  0x23   :  { %3481 = vmatpush3.bf16.msra.mxu1 %v3816_v10 }
  0x24   :  { %3488 = vmatprep.subr.bf16.mxu1 %v3763_v0  ;;  %3243 = vmatmul.mubr.msk.f32.gmra.mrb[6].mxu0 %vm44_vm1, %v33_v53 }
  0x25   :  { %3275 = vmatprep.mubr.msk.f32.mxu0 %vm3764_vm0, %v3765_v1 }
  0xea   :  { %v3235_v11 = vpop.f32.mrb[0].mxu0 }
  0xeb   :  { %v135_v13 = vpop.f32.mrb[1].mxu0  ;;  %v141_v33 = vadd.f32 %v3235_v11, %v3833_v12 }
  0xec   :  { %v136_v14 = vadd.f32 %v3833_v12, %v135_v13 }
  0xee   :  { %v3238_v57 = vpop.f32.mrb[2].mxu0 }
  0xef   :  { %v145_v58 = vpop.f32.mrb[3].mxu0 }
  0xf0   :  { %v146_v2 = vadd.f32 %v3833_v12, %v145_v58 }
  0xf1   :  { %v244_v15 = vpop.f32.mrb[0].mxu1 }
  0xf2   :  { %v248_v16 = vadd.f32 %v244_v15, %v136_v14  ;;  %v3255_v17 = vpop.f32.mrb[1].mxu1 }
  0xf3   :  { %v3879_v59 = vpop.f32.mrb[4].mxu0 }
  0xf4   :  { %v3029_v18 = vmul.f32 -1.442695, %v248_v16  ;;  %v3881_v60 = vpop.f32.mrb[5].mxu0 }
  0xf6   :  { %3568 = vpow2.f32 %v3029_v18 }
  0xf7   :  { %v3883_v61 = vpop.f32.mrb[6].mxu0 }
  0xf8   :  { %v3885_v62 = vpop.f32.mrb[7].mxu0 }
 0x100   :  { %v3569_v19 = vpop.eup %3568 }
 0x101   :  { %v252_v20 = vadd.f32 1.0, %v3569_v19 }
 0x103   :  { %3570 = vrcp.f32 %v252_v20 }
 0x10d   :  { %v3571_v21 = vpop.eup %3570 }
 0x10e   :  { %v255_v22 = vmul.f32 2.0, %v3571_v21  ;;  %v257_v26 = vmul.f32 0.0, %v3571_v21 }
 0x110   :  { %v3030_v23 = vadd.f32 -1.0, %v255_v22 }
 0x112   :  { %259 = vrot.lane.b32.xlu0 %v3030_v23, %s3766_s26 }
 0x184   :  { %v260_v24 = vpop.permute.xlu0 %259 }
 0x185   :  { %v262_v25 = vmul.f32 %v3571_v21, %v260_v24  ;;  %v151_v24 = vadd.f32 %v3238_v57, %v3833_v12 }
 0x187   :  { %264 = vrot.lane.b32.xlu0 %v262_v25, %s3767_s27 }
 0x1f9   :  { %v265_v27 = vpop.permute.xlu0 %264 }
 0x1fa   :  { %v267_v28 = vadd.f32 %v265_v27, %v257_v26 }
 0x1fc   :  { %3572 = vtanh.f32 %v267_v28 }
 0x206   :  { %v3573_v29 = vpop.eup %3572 }
 0x207   :  { %270 = vrot.lane.b32.xlu1 %v3573_v29, %s3766_s26 }
 0x279   :  { %v271_v30 = vpop.permute.xlu1 %270 }
 0x27a   :  { %v273_v31 = vmul.f32 %v3571_v21, %v271_v30 }
 0x27c   :  { %275 = vrot.lane.b32.xlu1 %v273_v31, %s3767_s27 }
 0x2ee   :  { %v276_v32 = vpop.permute.xlu1 %275 }
 0x2ef   :  { %278 = vst.msk [vmem:[#allocation2] sm:$0xff] %vm174_vm2, %v276_v32  ;;  %3265 = vmatmul.mubr.msk.f32.vlgmr.msra.gmra.mrb[2].mxu1 %vm174_vm2, %v276_v32 }
 0x2f0   :  { %3490 = vmatpush3.bf16.msra.mxu1 %v3805_v5  ;;  %3286 = vmatprep.mubr.msk.f32.mxu1 %vm3764_vm0, %v3765_v1 }
 0x2f1   :  { %3491 = vmatprep.subr.bf16.mxu1 %v3763_v0 }
 0x2f4   :  { %3493 = vmatpush3.bf16.msra.mxu1 %v3816_v10 }
 0x2f5   :  { %3500 = vmatprep.subr.bf16.mxu1 %v3763_v0 }
 0x3c2   :  { %v347_v34 = vpop.f32.mrb[2].mxu1 }
 0x3c3   :  { %v351_v35 = vadd.f32 %v347_v34, %v141_v33  ;;  %v3266_v36 = vpop.f32.mrb[3].mxu1 }
 0x3c5   :  { %v3032_v37 = vmul.f32 -1.442695, %v351_v35 }
 0x3c7   :  { %3574 = vpow2.f32 %v3032_v37 }
 0x3d1   :  { %v3575_v38 = vpop.eup %3574 }
 0x3d2   :  { %v355_v39 = vadd.f32 1.0, %v3575_v38 }
 0x3d4   :  { %3576 = vrcp.f32 %v355_v39 }
 0x3de   :  { %v3577_v40 = vpop.eup %3576 }
 0x3df   :  { %v358_v41 = vmul.f32 2.0, %v3577_v40  ;;  %v360_v45 = vmul.f32 %v3577_v40, %v267_v28 }
 0x3e1   :  { %v3033_v42 = vadd.f32 -1.0, %v358_v41 }
 0x3e3   :  { %362 = vrot.lane.b32.xlu0 %v3033_v42, %s3766_s26 }
 0x455   :  { %v363_v43 = vpop.permute.xlu0 %362 }
 0x456   :  { %v365_v44 = vmul.f32 %v3577_v40, %v363_v43  ;;  %v156_v43 = vadd.f32 %v3833_v12, %v3881_v60 }
 0x458   :  { %367 = vrot.lane.b32.xlu1 %v365_v44, %s3767_s27 }
 0x4ca   :  { %v368_v46 = vpop.permute.xlu1 %367 }
 0x4cb   :  { %v370_v47 = vadd.f32 %v368_v46, %v360_v45 }
 0x4cd   :  { %3578 = vtanh.f32 %v370_v47 }
 0x4d7   :  { %v3579_v54 = vpop.eup %3578 }
 0x4d8   :  { %373 = vrot.lane.b32.xlu0 %v3579_v54, %s3766_s26 }
 0x54a   :  { %v374_v55 = vpop.permute.xlu0 %373 }
 0x54b   :  { %v376_v56 = vmul.f32 %v3577_v40, %v374_v55 }
 0x54d   :  { %378 = vrot.lane.b32.xlu1 %v376_v56, %s3767_s27 }
 0x5bf   :  { %v379_v63 = vpop.permute.xlu1 %378 }
 0x5c0   :  { %381 = vst.msk [vmem:[#allocation2 + $0x8] sm:$0xff] %vm174_vm2, %v379_v63  ;;  %3276 = vmatmul.mubr.msk.f32.vlgmr.msra.gmra.mrb[8].mxu0 %vm174_vm2, %v379_v63 }
 0x5c1   :  { %3496 = vmatpush3.bf16.msra.mxu0 %v3805_v5  ;;  %3297 = vmatprep.mubr.msk.f32.mxu0 %vm3764_vm0, %v3765_v1 }
 0x5c2   :  { %3497 = vmatprep.subr.bf16.mxu0 %v3763_v0 }
 0x5c5   :  { %3499 = vmatpush3.bf16.msra.mxu0 %v3816_v10 }
 0x5c6   :  { %3506 = vmatprep.subr.bf16.mxu0 %v3763_v0 }
 0x693   :  { %v450_v3 = vpop.f32.mrb[8].mxu0 }
 0x694   :  { %v454_v4 = vadd.f32 %v450_v3, %v146_v2  ;;  %v3277_v6 = vpop.f32.mrb[9].mxu0  ;;  %v161_v3 = vadd.f32 %v3879_v59, %v3833_v12 }
 0x696   :  { %v3035_v7 = vmul.f32 -1.442695, %v454_v4 }
 0x698   :  { %3580 = vpow2.f32 %v3035_v7 }
 0x6a2   :  { %v3581_v8 = vpop.eup %3580 }
 0x6a3   :  { %v458_v9 = vadd.f32 1.0, %v3581_v8 }
 0x6a5   :  { %3582 = vrcp.f32 %v458_v9 }
 0x6af   :  { %v3583_v11 = vpop.eup %3582 }
 0x6b0   :  { %v461_v13 = vmul.f32 2.0, %v3583_v11  ;;  %v463_v17 = vmul.f32 %v3583_v11, %v370_v47 }
 0x6b2   :  { %v3036_v14 = vadd.f32 -1.0, %v461_v13 }
 0x6b4   :  { %465 = vrot.lane.b32.xlu0 %v3036_v14, %s3766_s26 }
 0x726   :  { %v466_v15 = vpop.permute.xlu0 %465 }
 0x727   :  { %v468_v16 = vmul.f32 %v3583_v11, %v466_v15 }
 0x729   :  { %470 = vrot.lane.b32.xlu1 %v468_v16, %s3767_s27 }
 0x79b   :  { %v471_v18 = vpop.permute.xlu1 %470 }
 0x79c   :  { %v473_v19 = vadd.f32 %v471_v18, %v463_v17  ;;  %v1008_v18 = vld [vmem:[#allocation4 + $0x30] sm:$0xff] }
 0x79e   :  { %3584 = vtanh.f32 %v473_v19 }
 0x7a8   :  { %v3585_v20 = vpop.eup %3584 }
 0x7a9   :  { %476 = vrot.lane.b32.xlu0 %v3585_v20, %s3766_s26 }
 0x81b   :  { %v477_v21 = vpop.permute.xlu0 %476 }
 0x81c   :  { %v479_v22 = vmul.f32 %v3583_v11, %v477_v21 }
 0x81e   :  { %481 = vrot.lane.b32.xlu1 %v479_v22, %s3767_s27 }
 0x890   :  { %v482_v23 = vpop.permute.xlu1 %481 }
 0x891   :  { %484 = vst.msk [vmem:[#allocation2 + $0x10] sm:$0xff] %vm174_vm2, %v482_v23  ;;  %3287 = vmatmul.mubr.msk.f32.vlgmr.msra.gmra.mrb[4].mxu1 %vm174_vm2, %v482_v23 }
 0x892   :  { %3502 = vmatpush3.bf16.msra.mxu1 %v3805_v5  ;;  %3308 = vmatprep.mubr.msk.f32.mxu1 %vm3764_vm0, %v3765_v1 }
 0x893   :  { %3503 = vmatprep.subr.bf16.mxu1 %v3763_v0 }
 0x896   :  { %3505 = vmatpush3.bf16.msra.mxu1 %v3816_v10 }
 0x897   :  { %3512 = vmatprep.subr.bf16.mxu1 %v3763_v0 }
 0x964   :  { %v553_v25 = vpop.f32.mrb[4].mxu1 }
 0x965   :  { %v557_v26 = vadd.f32 %v553_v25, %v151_v24  ;;  %v3288_v27 = vpop.f32.mrb[5].mxu1  ;;  %v1010_v24 = vld [vmem:[#allocation4 + $0x40] sm:$0xff]  ;;  %v1011_v25 = vld [vmem:[#allocation4 + $0x48] sm:$0xff] }
 0x967   :  { %v3038_v28 = vmul.f32 -1.442695, %v557_v26  ;;  %v3522_v26 = vpack.c.bf16 %v1011_v25, %v1010_v24 }
 0x969   :  { %3586 = vpow2.f32 %v3038_v28  ;;  %v1000_v28 = vld [vmem:[#allocation2] sm:$0xff] }
 0x973   :  { %v3587_v29 = vpop.eup %3586 }
 0x974   :  { %v561_v30 = vadd.f32 1.0, %v3587_v29  ;;  %v1001_v29 = vld [vmem:[#allocation2 + $0x8] sm:$0xff] }
 0x976   :  { %3588 = vrcp.f32 %v561_v30  ;;  %v1002_v30 = vld [vmem:[#allocation2 + $0x10] sm:$0xff] }
 0x980   :  { %v3589_v31 = vpop.eup %3588 }
 0x981   :  { %v564_v32 = vmul.f32 2.0, %v3589_v31  ;;  %v566_v36 = vmul.f32 %v3589_v31, %v473_v19  ;;  %v1009_v19 = vld [vmem:[#allocation4 + $0x38] sm:$0xff] }
 0x982   :  { %v3518_v20 = vpack.c.bf16 %v1009_v19, %v1008_v18 }
 0x983   :  { %v3039_v33 = vadd.f32 -1.0, %v564_v32 }
 0x985   :  { %568 = vrot.lane.b32.xlu0 %v3039_v33, %s3766_s26 }
 0x9f7   :  { %v569_v34 = vpop.permute.xlu0 %568 }
 0x9f8   :  { %v571_v35 = vmul.f32 %v3589_v31, %v569_v34  ;;  %v166_v34 = vadd.f32 %v3833_v12, %v3885_v62 }
 0x9fa   :  { %573 = vrot.lane.b32.xlu1 %v571_v35, %s3767_s27 }
 0xa6c   :  { %v574_v37 = vpop.permute.xlu1 %573 }
 0xa6d   :  { %v576_v38 = vadd.f32 %v574_v37, %v566_v36 }
 0xa6f   :  { %3590 = vtanh.f32 %v576_v38 }
 0xa79   :  { %v3591_v39 = vpop.eup %3590 }
 0xa7a   :  { %579 = vrot.lane.b32.xlu0 %v3591_v39, %s3766_s26 }
 0xaec   :  { %v580_v40 = vpop.permute.xlu0 %579 }
 0xaed   :  { %v582_v41 = vmul.f32 %v3589_v31, %v580_v40 }
 0xaef   :  { %584 = vrot.lane.b32.xlu1 %v582_v41, %s3767_s27 }
 0xb61   :  { %v585_v42 = vpop.permute.xlu1 %584 }
 0xb62   :  { %587 = vst.msk [vmem:[#allocation2 + $0x18] sm:$0xff] %vm174_vm2, %v585_v42  ;;  %3298 = vmatmul.mubr.msk.f32.vlgmr.msra.gmra.mrb[10].mxu0 %vm174_vm2, %v585_v42 }
 0xb63   :  { %3508 = vmatpush3.bf16.msra.mxu0 %v3805_v5  ;;  %3319 = vmatprep.mubr.msk.f32.mxu0 %vm3764_vm0, %v3765_v1 }
 0xb64   :  { %3509 = vmatprep.subr.bf16.mxu0 %v3763_v0 }
 0xb67   :  { %3511 = vmatpush3.bf16.msra.mxu0 %v3816_v10 }
 0xb68   :  { %3519 = vmatprep.subr.bf16.mxu0 %v3518_v20 }
 0xb69   :  { %v1003_v31 = vld [vmem:[#allocation2 + $0x18] sm:$0xff] }
 0xc35   :  { %v656_v44 = vpop.f32.mrb[10].mxu0 }
 0xc36   :  { %v660_v45 = vadd.f32 %v656_v44, %v156_v43  ;;  %v3299_v46 = vpop.f32.mrb[11].mxu0 }
 0xc38   :  { %v3041_v47 = vmul.f32 -1.442695, %v660_v45 }
 0xc3a   :  { %3592 = vpow2.f32 %v3041_v47 }
 0xc44   :  { %v3593_v48 = vpop.eup %3592 }
 0xc45   :  { %v664_v49 = vadd.f32 1.0, %v3593_v48 }
 0xc47   :  { %3594 = vrcp.f32 %v664_v49 }
 0xc51   :  { %v3595_v50 = vpop.eup %3594 }
 0xc52   :  { %v667_v51 = vmul.f32 2.0, %v3595_v50  ;;  %v669_v55 = vmul.f32 %v3595_v50, %v576_v38 }
 0xc54   :  { %v3042_v52 = vadd.f32 -1.0, %v667_v51 }
 0xc56   :  { %671 = vrot.lane.b32.xlu0 %v3042_v52, %s3766_s26 }
 0xcc8   :  { %v672_v53 = vpop.permute.xlu0 %671 }
 0xcc9   :  { %v674_v54 = vmul.f32 %v3595_v50, %v672_v53 }
 0xccb   :  { %676 = vrot.lane.b32.xlu1 %v674_v54, %s3767_s27 }
 0xd3d   :  { %v677_v56 = vpop.permute.xlu1 %676 }
 0xd3e   :  { %v679_v57 = vadd.f32 %v677_v56, %v669_v55  ;;  %v1012_v55 = vld [vmem:[#allocation4 + $0x50] sm:$0xff]  ;;  %v1013_v56 = vld [vmem:[#allocation4 + $0x58] sm:$0xff] }
 0xd40   :  { %3596 = vtanh.f32 %v679_v57 }
 0xd4a   :  { %v3597_v58 = vpop.eup %3596 }
 0xd4b   :  { %682 = vrot.lane.b32.xlu0 %v3597_v58, %s3766_s26 }
 0xdbd   :  { %v683_v60 = vpop.permute.xlu0 %682 }
 0xdbe   :  { %v685_v63 = vmul.f32 %v3595_v50, %v683_v60 }
 0xdc0   :  { %687 = vrot.lane.b32.xlu1 %v685_v63, %s3767_s27 }
 0xe32   :  { %v688_v2 = vpop.permute.xlu1 %687 }
 0xe33   :  { %690 = vst.msk [vmem:[#allocation2 + $0x20] sm:$0xff] %vm174_vm2, %v688_v2  ;;  %3309 = vmatmul.mubr.msk.f32.vlgmr.msra.gmra.mrb[6].mxu1 %vm174_vm2, %v688_v2 }
 0xe34   :  { %3514 = vmatpush3.bf16.msra.mxu1 %v3805_v5  ;;  %3330 = vmatprep.mubr.msk.f32.mxu1 %vm3764_vm0, %v3765_v1 }
 0xe35   :  { %3515 = vmatprep.subr.bf16.mxu1 %v3763_v0 }
 0xe38   :  { %3517 = vmatpush3.bf16.msra.mxu1 %v3816_v10 }
 0xe39   :  { %3526 = vmatprep.subr.bf16.mxu1 %v3763_v0 }
 0xe3a   :  { %v1004_v32 = vld [vmem:[#allocation2 + $0x20] sm:$0xff] }
 0xf06   :  { %v759_v4 = vpop.f32.mrb[6].mxu1 }
 0xf07   :  { %v763_v6 = vadd.f32 %v759_v4, %v161_v3  ;;  %v3310_v7 = vpop.f32.mrb[7].mxu1  ;;  %v171_v3 = vadd.f32 %v3883_v61, %v3833_v12  ;;  %v3986_v4 = vld [vmem:[#allocation4 + $0x60] ss:$0 sm:$0xff] }
 0xf09   :  { %v3044_v8 = vmul.f32 -1.442695, %v763_v6 }
 0xf0b   :  { %3598 = vpow2.f32 %v3044_v8 }
 0xf15   :  { %v3599_v9 = vpop.eup %3598 }
 0xf16   :  { %v767_v11 = vadd.f32 1.0, %v3599_v9 }
 0xf18   :  { %3600 = vrcp.f32 %v767_v11 }
 0xf22   :  { %v3601_v5 = vpop.eup %3600 }
 0xf23   :  { %v770_v13 = vmul.f32 2.0, %v3601_v5  ;;  %v772_v16 = vmul.f32 %v3601_v5, %v679_v57  ;;  %v3967_v57 = vpack.c.bf16 %v1013_v56, %v1012_v55 }
 0xf25   :  { %v3045_v14 = vadd.f32 -1.0, %v770_v13 }
 0xf27   :  { %774 = vrot.lane.b32.xlu0 %v3045_v14, %s3766_s26 }
 0xf99   :  { %v775_v15 = vpop.permute.xlu0 %774 }
 0xf9a   :  { %v777_v10 = vmul.f32 %v3601_v5, %v775_v15 }
 0xf9c   :  { %779 = vrot.lane.b32.xlu1 %v777_v10, %s3767_s27 }
0x100e   :  { %v780_v17 = vpop.permute.xlu1 %779 }
0x100f   :  { %v782_v59 = vadd.f32 %v780_v17, %v772_v16 }
0x1011   :  { %3602 = vtanh.f32 %v782_v59 }
0x101b   :  { %v3603_v21 = vpop.eup %3602 }
0x101c   :  { %785 = vrot.lane.b32.xlu0 %v3603_v21, %s3766_s26 }
0x108e   :  { %v786_v22 = vpop.permute.xlu0 %785 }
0x108f   :  { %v788_v23 = vmul.f32 %v3601_v5, %v786_v22 }
0x1091   :  { %790 = vrot.lane.b32.xlu1 %v788_v23, %s3767_s27 }
0x1103   :  { %v791_v27 = vpop.permute.xlu1 %790 }
0x1104   :  { %793 = vst.msk [vmem:[#allocation2 + $0x28] sm:$0xff] %vm174_vm2, %v791_v27  ;;  %3320 = vmatmul.mubr.msk.f32.vlgmr.msra.gmra.mrb[12].mxu0 %vm174_vm2, %v791_v27 }
0x1105   :  { %3521 = vmatpush3.bf16.msra.mxu0 %v3518_v20  ;;  %3341 = vmatprep.mubr.msk.f32.mxu0 %vm174_vm2, %v1000_v28 }
0x1106   :  { %3523 = vmatprep.subr.bf16.mxu0 %v3522_v26 }
0x1109   :  { %3525 = vmatpush3.bf16.msra.mxu0 %v3522_v26 }
0x110a   :  { %3538 = vmatprep.subr.bf16.mxu0 %v3763_v0 }
0x110b   :  { %v1005_v33 = vld [vmem:[#allocation2 + $0x28] sm:$0xff] }
0x110c   :  { %3342 = vmatmul.mubr.msk.f32.vlgmr.msra.gmra.mrb[14].mxu0 %vm174_vm2, %v1001_v29 }
0x110d   :  { %3344 = vmatprep.mubr.msk.f32.mxu0 %vm174_vm2, %v1002_v30  ;;  %3540 = vmatpush3.bf16.msra.mxu0 %v3967_v57 }
0x110e   :  { %3544 = vmatprep.subr.bf16.mxu0 %v3763_v0 }
0x1110   :  { %3345 = vmatmul.mubr.msk.f32.gmra.mrb[16].mxu0 %vm174_vm2, %v1003_v31 }
0x1111   :  { %3347 = vmatprep.mubr.msk.f32.mxu0 %vm174_vm2, %v1004_v32 }
0x1114   :  { %3348 = vmatmul.mubr.msk.f32.gmra.mrb[18].mxu0 %vm174_vm2, %v1005_v33 }
0x11d7   :  { %v862_v35 = vpop.f32.mrb[12].mxu0 }
0x11d8   :  { %v866_v36 = vadd.f32 %v862_v35, %v166_v34  ;;  %v3321_v37 = vpop.f32.mrb[13].mxu0 }
0x11da   :  { %v3047_v38 = vmul.f32 -1.442695, %v866_v36 }
0x11dc   :  { %3604 = vpow2.f32 %v3047_v38 }
0x11df   :  { %v3951_v39 = vpop.f32.mrb[14].mxu0 }
0x11e0   :  { %v1109_v40 = vpop.f32.mrb[15].mxu0  ;;  %v1115_v25 = vadd.f32 %v3951_v39, %v3986_v4 }
0x11e1   :  { %v1110_v9 = vadd.f32 %v3986_v4, %v1109_v40 }
0x11e3   :  { %v3953_v41 = vpop.f32.mrb[16].mxu0 }
0x11e4   :  { %v3955_v42 = vpop.f32.mrb[17].mxu0 }
0x11e6   :  { %v3605_v43 = vpop.eup %3604 }
0x11e7   :  { %v870_v44 = vadd.f32 1.0, %v3605_v43  ;;  %v3957_v45 = vpop.f32.mrb[18].mxu0 }
0x11e8   :  { %v3959_v46 = vpop.f32.mrb[19].mxu0 }
0x11e9   :  { %3606 = vrcp.f32 %v870_v44 }
0x11f3   :  { %v3607_v62 = vpop.eup %3606 }
0x11f4   :  { %v873_v47 = vmul.f32 2.0, %v3607_v62  ;;  %v875_v51 = vmul.f32 %v3607_v62, %v782_v59 }
0x11f6   :  { %v3048_v48 = vadd.f32 -1.0, %v873_v47  ;;  %v1120_v47 = vadd.f32 %v3986_v4, %v3955_v42 }
0x11f8   :  { %877 = vrot.lane.b32.xlu0 %v3048_v48, %s3766_s26 }
0x126a   :  { %v878_v49 = vpop.permute.xlu0 %877 }
0x126b   :  { %v880_v50 = vmul.f32 %v3607_v62, %v878_v49 }
0x126d   :  { %882 = vrot.lane.b32.xlu1 %v880_v50, %s3767_s27 }
0x12df   :  { %v883_v52 = vpop.permute.xlu1 %882 }
0x12e0   :  { %v3963_v53 = vadd.f32 %v883_v52, %v875_v51 }
0x12e2   :  { %3608 = vtanh.f32 %v3963_v53 }
0x12ec   :  { %v3609_v54 = vpop.eup %3608 }
0x12ed   :  { %888 = vrot.lane.b32.xlu0 %v3609_v54, %s3766_s26 }
0x135f   :  { %v889_v58 = vpop.permute.xlu0 %888 }
0x1360   :  { %v891_v60 = vmul.f32 %v3607_v62, %v889_v58 }
0x1362   :  { %893 = vrot.lane.b32.xlu1 %v891_v60, %s3767_s27 }
0x13d4   :  { %v894_v63 = vpop.permute.xlu1 %893 }
0x13d5   :  { %896 = vst.msk [vmem:[#allocation2 + $0x30] sm:$0xff] %vm174_vm2, %v894_v63  ;;  %3331 = vmatmul.mubr.msk.f32.vlgmr.msra.gmra.mrb[8].mxu1 %vm174_vm2, %v894_v63 }
0x13d6   :  { %3528 = vmatpush3.bf16.msra.mxu1 %v3967_v57  ;;  %3357 = vmatprep.mubr.msk.f32.mxu1 %vm3764_vm0, %v3765_v1 }
0x13d7   :  { %3529 = vmatprep.subr.bf16.mxu1 %v3763_v0 }
0x13d9   :  { %3358 = vmatmul.mubr.f32.vlgmr.msra.gmra.mrb[10].mxu1 %v3765_v1 }
0x13da   :  { %3531 = vmatpush3.bf16.msra.mxu1 %v3967_v57  ;;  %3364 = vmatprep.mubr.msk.f32.mxu1 %vm3764_vm0, %v3765_v1 }
0x13db   :  { %3532 = vmatprep.subr.bf16.mxu1 %v3763_v0 }
0x13dc   :  { %v1006_v2 = vld [vmem:[#allocation2 + $0x30] sm:$0xff] }
0x13dd   :  { %3350 = vmatprep.mubr.msk.f32.mxu0 %vm174_vm2, %v1006_v2 }
0x14a8   :  { %v965_v6 = vpop.f32.mrb[8].mxu1 }
0x14a9   :  { %v3988_v7 = vadd.f32 %v965_v6, %v171_v3  ;;  %v3332_v8 = vpop.f32.mrb[9].mxu1 }
0x14ab   :  { %v3050_v2 = vmul.f32 -1.442695, %v3988_v7 }
0x14ac   :  { %v1217_v11 = vpop.f32.mrb[10].mxu1 }
0x14ad   :  { %v1221_v5 = vadd.f32 %v1217_v11, %v1110_v9  ;;  %v3359_v13 = vpop.f32.mrb[11].mxu1 }
0x14af   :  { %v3061_v14 = vmul.f32 -1.442695, %v1221_v5 }
0x14b1   :  { %3610 = vpow2.f32 %v3061_v14 }
0x14bb   :  { %v3611_v15 = vpop.eup %3610 }
0x14bc   :  { %v1225_v10 = vadd.f32 1.0, %v3611_v15 }
0x14be   :  { %3612 = vrcp.f32 %v1225_v10 }
0x14c8   :  { %v3613_v16 = vpop.eup %3612 }
0x14c9   :  { %v1228_v17 = vmul.f32 2.0, %v3613_v16  ;;  %v1230_v18 = vmul.f32 0.0, %v3613_v16 }
0x14cb   :  { %v3062_v59 = vadd.f32 -1.0, %v1228_v17 }
0x14cd   :  { %1232 = vrot.lane.b32.xlu0 %v3062_v59, %s3768_s0 }
0x153f   :  { %v1233_v12 = vpop.permute.xlu0 %1232 }
0x1540   :  { %v1235_v61 = vmul.f32 %v3613_v16, %v1233_v12 }
0x1542   :  { %1237 = vrot.lane.b32.xlu1 %v1235_v61, %s3769_s12 }
0x15b4   :  { %v1238_v19 = vpop.permute.xlu1 %1237 }
0x15b5   :  { %v1240_v20 = vadd.f32 %v1238_v19, %v1230_v18 }
0x15b7   :  { %3614 = vtanh.f32 %v1240_v20 }
0x15c1   :  { %v3615_v21 = vpop.eup %3614 }
0x15c2   :  { %1243 = vrot.lane.b32.xlu0 %v3615_v21, %s3767_s27  ;;  %v1125_v21 = vadd.f32 %v3953_v41, %v3986_v4 }
0x1634   :  { %v1244_v22 = vpop.permute.xlu0 %1243 }
0x1635   :  { %v1246_v23 = vmul.f32 %v3613_v16, %v1244_v22 }
0x1637   :  { %1248 = vrot.lane.b32.xlu1 %v1246_v23, %s3770_s13 }
0x16a9   :  { %v1249_v24 = vpop.permute.xlu1 %1248 }
0x16aa   :  { %1251 = vst.msk [vmem:[#allocation3] sm:$0xff] %vm1148_vm3, %v1249_v24  ;;  %3365 = vmatmul.mubr.msk.f32.vlgmr.msra.gmra.mrb[12].mxu1 %vm1148_vm3, %v1249_v24 }
0x16ab   :  { %3534 = vmatpush3.bf16.msra.mxu1 %v3967_v57  ;;  %3371 = vmatprep.mubr.msk.f32.mxu1 %vm3764_vm0, %v3765_v1 }
0x16ac   :  { %3535 = vmatprep.subr.bf16.mxu1 %v3763_v0 }
0x177d   :  { %v1320_v26 = vpop.f32.mrb[12].mxu1 }
0x177e   :  { %v1324_v27 = vadd.f32 %v1320_v26, %v1115_v25  ;;  %v3366_v28 = vpop.f32.mrb[13].mxu1 }
0x1780   :  { %v3064_v29 = vmul.f32 -1.442695, %v1324_v27 }
0x1782   :  { %3616 = vpow2.f32 %v3064_v29 }
0x178c   :  { %v3617_v30 = vpop.eup %3616 }
0x178d   :  { %v1328_v31 = vadd.f32 1.0, %v3617_v30 }
0x178f   :  { %3618 = vrcp.f32 %v1328_v31 }
0x1799   :  { %v3619_v32 = vpop.eup %3618 }
0x179a   :  { %v1331_v33 = vmul.f32 2.0, %v3619_v32  ;;  %v1333_v37 = vmul.f32 %v3619_v32, %v1240_v20 }
0x179c   :  { %v3065_v34 = vadd.f32 -1.0, %v1331_v33 }
0x179e   :  { %1335 = vrot.lane.b32.xlu0 %v3065_v34, %s3768_s0 }
0x1810   :  { %v1336_v35 = vpop.permute.xlu0 %1335 }
0x1811   :  { %v1338_v36 = vmul.f32 %v3619_v32, %v1336_v35 }
0x1813   :  { %1340 = vrot.lane.b32.xlu1 %v1338_v36, %s3769_s12 }
0x1885   :  { %v1341_v38 = vpop.permute.xlu1 %1340 }
0x1886   :  { %v1343_v39 = vadd.f32 %v1341_v38, %v1333_v37 }
0x1888   :  { %3620 = vtanh.f32 %v1343_v39 }
0x1892   :  { %v3621_v40 = vpop.eup %3620 }
0x1893   :  { %1346 = vrot.lane.b32.xlu0 %v3621_v40, %s3767_s27 }
0x1905   :  { %v1347_v43 = vpop.permute.xlu0 %1346 }
0x1906   :  { %v1349_v44 = vmul.f32 %v3619_v32, %v1347_v43  ;;  %v1130_v43 = vadd.f32 %v3986_v4, %v3959_v46 }
0x1908   :  { %1351 = vrot.lane.b32.xlu1 %v1349_v44, %s3770_s13 }
0x197a   :  { %v1352_v62 = vpop.permute.xlu1 %1351 }
0x197b   :  { %1354 = vst.msk [vmem:[#allocation3 + $0x8] sm:$0xff] %vm1148_vm3, %v1352_v62  ;;  %3372 = vmatmul.mubr.msk.f32.vlgmr.msra.gmra.mrb[14].mxu1 %vm1148_vm3, %v1352_v62 }
0x197c   :  { %3537 = vmatpush3.bf16.msra.mxu1 %v3967_v57  ;;  %3378 = vmatprep.mubr.msk.f32.mxu1 %vm3764_vm0, %v3765_v1 }
0x197d   :  { %3541 = vmatprep.subr.bf16.mxu1 %v3763_v0 }
0x1a4e   :  { %v1423_v48 = vpop.f32.mrb[14].mxu1 }
0x1a4f   :  { %v1427_v49 = vadd.f32 %v1423_v48, %v1120_v47  ;;  %v3373_v50 = vpop.f32.mrb[15].mxu1 }
0x1a51   :  { %v3067_v51 = vmul.f32 -1.442695, %v1427_v49 }
0x1a53   :  { %3622 = vpow2.f32 %v3067_v51 }
0x1a5d   :  { %v3623_v52 = vpop.eup %3622 }
0x1a5e   :  { %v1431_v54 = vadd.f32 1.0, %v3623_v52 }
0x1a60   :  { %3624 = vrcp.f32 %v1431_v54 }
0x1a61   :  { %3626 = vpow2.f32 %v3050_v2 }
0x1a6a   :  { %v3625_v55 = vpop.eup %3624 }
0x1a6b   :  { %v1434_v56 = vmul.f32 2.0, %v3625_v55  ;;  %v3627_v42 = vpop.eup %3626  ;;  %v1436_v6 = vmul.f32 %v3625_v55, %v1343_v39 }
0x1a6c   :  { %v973_v3 = vadd.f32 1.0, %v3627_v42 }
0x1a6d   :  { %v3068_v58 = vadd.f32 -1.0, %v1434_v56 }
0x1a6e   :  { %3628 = vrcp.f32 %v973_v3 }
0x1a6f   :  { %1438 = vrot.lane.b32.xlu0 %v3068_v58, %s3768_s0 }
0x1a78   :  { %v3629_v11 = vpop.eup %3628 }
0x1a79   :  { %v976_v5 = vmul.f32 2.0, %v3629_v11  ;;  %v978_v59 = vmul.f32 %v3629_v11, %v3963_v53 }
0x1a7b   :  { %v3051_v14 = vadd.f32 -1.0, %v976_v5 }
0x1ae1   :  { %v1439_v60 = vpop.permute.xlu0 %1438 }
0x1ae2   :  { %v1441_v63 = vmul.f32 %v3625_v55, %v1439_v60 }
0x1ae4   :  { %1443 = vrot.lane.b32.xlu1 %v1441_v63, %s3769_s12 }
0x1b56   :  { %v1444_v8 = vpop.permute.xlu1 %1443 }
0x1b57   :  { %v1446_v9 = vadd.f32 %v1444_v8, %v1436_v6  ;;  %v1135_v6 = vadd.f32 %v3957_v45, %v3986_v4 }
0x1b59   :  { %3630 = vtanh.f32 %v1446_v9 }
0x1b63   :  { %v3631_v13 = vpop.eup %3630 }
0x1b64   :  { %1449 = vrot.lane.b32.xlu0 %v3631_v13, %s3767_s27 }
0x1b68   :  { %980 = vrot.lane.b32.xlu0 %v3051_v14, %s3766_s26 }
0x1bd6   :  { %v1450_v15 = vpop.permute.xlu0 %1449 }
0x1bd7   :  { %v1452_v10 = vmul.f32 %v3625_v55, %v1450_v15 }
0x1bd9   :  { %1454 = vrot.lane.b32.xlu1 %v1452_v10, %s3770_s13 }
0x1bda   :  { %v981_v7 = vpop.permute.xlu0 %980 }
0x1bdb   :  { %v983_v16 = vmul.f32 %v3629_v11, %v981_v7 }
0x1bdd   :  { %985 = vrot.lane.b32.xlu0 %v983_v16, %s3767_s27 }
0x1c4b   :  { %v1455_v17 = vpop.permute.xlu1 %1454 }
0x1c4c   :  { %1457 = vst.msk [vmem:[#allocation3 + $0x10] sm:$0xff] %vm1148_vm3, %v1455_v17  ;;  %3379 = vmatmul.mubr.msk.f32.vlgmr.msra.gmra.mrb[16].mxu1 %vm1148_vm3, %v1455_v17 }
0x1c4d   :  { %3543 = vmatpush3.bf16.msra.mxu1 %v3967_v57  ;;  %3392 = vmatprep.mubr.msk.f32.mxu1 %vm3764_vm0, %v3765_v1 }
0x1c4e   :  { %3547 = vmatprep.subr.bf16.mxu1 %v3763_v0 }
0x1c4f   :  { %v986_v12 = vpop.permute.xlu0 %985 }
0x1c50   :  { %v988_v61 = vadd.f32 %v986_v12, %v978_v59 }
0x1c52   :  { %3632 = vtanh.f32 %v988_v61  ;;  %v1981_v61 = vld [vmem:[#allocation4 + $0x68] sm:$0xff] }
0x1c5c   :  { %v3633_v18 = vpop.eup %3632 }
0x1c5d   :  { %991 = vrot.lane.b32.xlu0 %v3633_v18, %s3766_s26  ;;  %v1982_v18 = vld [vmem:[#allocation4 + $0x70] sm:$0xff] }
0x1ccf   :  { %v992_v19 = vpop.permute.xlu0 %991 }
0x1cd0   :  { %v994_v20 = vmul.f32 %v3629_v11, %v992_v19  ;;  %v3550_v19 = vpack.c.bf16 %v1982_v18, %v1981_v61 }
0x1cd2   :  { %996 = vrot.lane.b32.xlu0 %v994_v20, %s3767_s27 }
0x1d1f   :  { %v1526_v22 = vpop.f32.mrb[16].mxu1 }
0x1d20   :  { %v1530_v23 = vadd.f32 %v1526_v22, %v1125_v21  ;;  %v3380_v24 = vpop.f32.mrb[17].mxu1 }
0x1d21   :  { %v1974_v24 = vld [vmem:[#allocation3 + $0x8] sm:$0xff] }
0x1d22   :  { %v3070_v25 = vmul.f32 -1.442695, %v1530_v23  ;;  %v1973_v23 = vld [vmem:[#allocation3] sm:$0xff] }
0x1d24   :  { %3634 = vpow2.f32 %v3070_v25  ;;  %v1975_v25 = vld [vmem:[#allocation3 + $0x10] sm:$0xff] }
0x1d2e   :  { %v3635_v53 = vpop.eup %3634 }
0x1d2f   :  { %v1534_v0 = vadd.f32 1.0, %v3635_v53 }
0x1d31   :  { %3636 = vrcp.f32 %v1534_v0 }
0x1d3b   :  { %v3637_v26 = vpop.eup %3636 }
0x1d3c   :  { %v1537_v27 = vmul.f32 2.0, %v3637_v26  ;;  %v1539_v34 = vmul.f32 %v3637_v26, %v1446_v9 }
0x1d3e   :  { %v3071_v28 = vadd.f32 -1.0, %v1537_v27 }
0x1d40   :  { %1541 = vrot.lane.b32.xlu1 %v3071_v28, %s3768_s0 }
0x1d44   :  { %v997_v29 = vpop.permute.xlu0 %996 }
0x1d45   :  { %999 = vst.msk [vmem:[#allocation2 + $0x38] sm:$0xff] %vm174_vm2, %v997_v29 }
0x1d4c   :  { %v1007_v30 = vld [vmem:[#allocation2 + $0x38] sm:$0xff] }
0x1d4d   :  { %3351 = vmatmul.mubr.msk.f32.gmra.mrb[20].mxu0 %vm174_vm2, %v1007_v30 }
0x1d4e   :  { %3385 = vmatprep.mubr.msk.f32.mxu0 %vm3764_vm0, %v3765_v1 }
0x1db2   :  { %v1542_v41 = vpop.permute.xlu1 %1541 }
0x1db3   :  { %v1544_v31 = vmul.f32 %v3637_v26, %v1542_v41 }
0x1db5   :  { %1546 = vrot.lane.b32.xlu1 %v1544_v31, %s3769_s12 }
0x1e20   :  { %v4039_v32 = vpop.f32.mrb[20].mxu0 }
0x1e21   :  { %v4041_v33 = vpop.f32.mrb[21].mxu0 }
0x1e22   :  { %v1140_v27 = vadd.f32 %v3986_v4, %v4041_v33 }
0x1e27   :  { %v1547_v35 = vpop.permute.xlu1 %1546 }
0x1e28   :  { %v1549_v36 = vadd.f32 %v1547_v35, %v1539_v34 }
0x1e2a   :  { %3638 = vtanh.f32 %v1549_v36 }
0x1e34   :  { %v3639_v37 = vpop.eup %3638 }
0x1e35   :  { %1552 = vrot.lane.b32.xlu1 %v3639_v37, %s3767_s27 }
0x1ea7   :  { %v1553_v38 = vpop.permute.xlu1 %1552 }
0x1ea8   :  { %v1555_v39 = vmul.f32 %v3637_v26, %v1553_v38 }
0x1eaa   :  { %1557 = vrot.lane.b32.xlu1 %v1555_v39, %s3770_s13 }
0x1f1c   :  { %v1558_v40 = vpop.permute.xlu1 %1557 }
0x1f1d   :  { %1560 = vst.msk [vmem:[#allocation3 + $0x18] sm:$0xff] %vm1148_vm3, %v1558_v40  ;;  %3386 = vmatmul.mubr.msk.f32.vlgmr.msra.gmra.mrb[22].mxu0 %vm1148_vm3, %v1558_v40 }
0x1f1e   :  { %3546 = vmatpush3.bf16.msra.mxu0 %v3967_v57  ;;  %3399 = vmatprep.mubr.msk.f32.mxu0 %vm3764_vm0, %v3765_v1 }
0x1f1f   :  { %3551 = vmatprep.subr.bf16.mxu0 %v3550_v19 }
0x1f24   :  { %v1976_v53 = vld [vmem:[#allocation3 + $0x18] sm:$0xff] }
0x1ff0   :  { %v1629_v44 = vpop.f32.mrb[22].mxu0 }
0x1ff1   :  { %v1633_v62 = vadd.f32 %v1629_v44, %v1130_v43  ;;  %v3387_v47 = vpop.f32.mrb[23].mxu0 }
0x1ff3   :  { %v3073_v48 = vmul.f32 -1.442695, %v1633_v62 }
0x1ff5   :  { %3640 = vpow2.f32 %v3073_v48 }
0x1fff   :  { %v3641_v49 = vpop.eup %3640 }
0x2000   :  { %v1637_v50 = vadd.f32 1.0, %v3641_v49 }
0x2002   :  { %3642 = vrcp.f32 %v1637_v50 }
0x200c   :  { %v3643_v51 = vpop.eup %3642 }
0x200d   :  { %v1640_v52 = vmul.f32 2.0, %v3643_v51  ;;  %v1642_v58 = vmul.f32 %v3643_v51, %v1549_v36 }
0x200f   :  { %v3074_v54 = vadd.f32 -1.0, %v1640_v52  ;;  %v4095_v52 = vld [vmem:[#allocation4 + $0x78] sm:$0xff] }
0x2011   :  { %1644 = vrot.lane.b32.xlu0 %v3074_v54, %s3768_s0 }
0x2083   :  { %v1645_v55 = vpop.permute.xlu0 %1644 }
0x2084   :  { %v1647_v56 = vmul.f32 %v3643_v51, %v1645_v55 }
0x2086   :  { %1649 = vrot.lane.b32.xlu1 %v1647_v56, %s3769_s12 }
0x20f8   :  { %v1650_v60 = vpop.permute.xlu1 %1649 }
0x20f9   :  { %v1652_v46 = vadd.f32 %v1650_v60, %v1642_v58  ;;  %v1145_v60 = vadd.f32 %v4039_v32, %v3986_v4 }
0x20fb   :  { %3644 = vtanh.f32 %v1652_v46 }
0x2105   :  { %v3645_v63 = vpop.eup %3644 }
0x2106   :  { %1655 = vrot.lane.b32.xlu0 %v3645_v63, %s3767_s27 }
0x2178   :  { %v1656_v2 = vpop.permute.xlu0 %1655 }
0x2179   :  { %v1658_v42 = vmul.f32 %v3643_v51, %v1656_v2 }
0x217b   :  { %1660 = vrot.lane.b32.xlu1 %v1658_v42, %s3770_s13 }
0x21ed   :  { %v1661_v3 = vpop.permute.xlu1 %1660 }
0x21ee   :  { %1663 = vst.msk [vmem:[#allocation3 + $0x20] sm:$0xff] %vm1148_vm3, %v1661_v3  ;;  %3393 = vmatmul.mubr.msk.f32.vlgmr.msra.gmra.mrb[18].mxu1 %vm1148_vm3, %v1661_v3 }
0x21ef   :  { %3549 = vmatpush3.bf16.msra.mxu1 %v3967_v57  ;;  %3406 = vmatprep.mubr.msk.f32.mxu1 %vm3764_vm0, %v3765_v1 }
0x21f0   :  { %3425 = vmatprep.subr.mxu1 %v3765_v1 }
0x21f5   :  { %v1977_v0 = vld [vmem:[#allocation3 + $0x20] sm:$0xff] }
0x22c1   :  { %v1732_v8 = vpop.f32.mrb[18].mxu1 }
0x22c2   :  { %v1736_v9 = vadd.f32 %v1732_v8, %v1135_v6  ;;  %v3394_v11 = vpop.f32.mrb[19].mxu1 }
0x22c4   :  { %v3076_v5 = vmul.f32 -1.442695, %v1736_v9 }
0x22c6   :  { %3646 = vpow2.f32 %v3076_v5 }
0x22d0   :  { %v3647_v13 = vpop.eup %3646 }
0x22d1   :  { %v1740_v14 = vadd.f32 1.0, %v3647_v13 }
0x22d3   :  { %3648 = vrcp.f32 %v1740_v14 }
0x22dd   :  { %v3649_v15 = vpop.eup %3648 }
0x22de   :  { %v1743_v10 = vmul.f32 2.0, %v3649_v15  ;;  %v1745_v17 = vmul.f32 %v3649_v15, %v1652_v46  ;;  %v4114_v46 = vld [vmem:[#allocation4 + $0x80] ss:$0 sm:$0xff] }
0x22e0   :  { %v3077_v7 = vadd.f32 -1.0, %v1743_v10 }
0x22e2   :  { %1747 = vrot.lane.b32.xlu0 %v3077_v7, %s3768_s0 }
0x2354   :  { %v1748_v57 = vpop.permute.xlu0 %1747 }
0x2355   :  { %v1750_v16 = vmul.f32 %v3649_v15, %v1748_v57 }
0x2357   :  { %1752 = vrot.lane.b32.xlu1 %v1750_v16, %s3769_s12 }
0x23c9   :  { %v1753_v59 = vpop.permute.xlu1 %1752 }
0x23ca   :  { %v1755_v45 = vadd.f32 %v1753_v59, %v1745_v17 }
0x23cc   :  { %3650 = vtanh.f32 %v1755_v45 }
0x23d6   :  { %v3651_v12 = vpop.eup %3650 }
0x23d7   :  { %1758 = vrot.lane.b32.xlu0 %v3651_v12, %s3767_s27 }
0x2449   :  { %v1759_v20 = vpop.permute.xlu0 %1758 }
0x244a   :  { %v1761_v21 = vmul.f32 %v3649_v15, %v1759_v20 }
0x244c   :  { %1763 = vrot.lane.b32.xlu1 %v1761_v21, %s3770_s13 }
0x24be   :  { %v1764_v22 = vpop.permute.xlu1 %1763 }
0x24bf   :  { %1766 = vst.msk [vmem:[#allocation3 + $0x28] sm:$0xff] %vm1148_vm3, %v1764_v22  ;;  %3400 = vmatmul.mubr.msk.f32.vlgmr.msra.gmra.mrb[24].mxu0 %vm1148_vm3, %v1764_v22 }
0x24c0   :  { %3553 = vmatpush3.bf16.msra.mxu0 %v3550_v19  ;;  %3413 = vmatprep.mubr.msk.f32.mxu0 %vm1148_vm3, %v1973_v23 }
0x24c1   :  { %3445 = vmatprep.subr.mxu0 %v3765_v1 }
0x24c3   :  { %3414 = vmatmul.mubr.msk.f32.vlgmr.msra.gmra.mrb[26].mxu0 %vm1148_vm3, %v1974_v24 }
0x24c4   :  { %3416 = vmatprep.mubr.msk.f32.mxu0 %vm1148_vm3, %v1975_v25  ;;  %3446 = vmatpush3.msra.mxu0 %v4095_v52 }
0x24c5   :  { %3455 = vmatprep.subr.mxu0 %v3765_v1 }
0x24c6   :  { %v1978_v26 = vld [vmem:[#allocation3 + $0x28] sm:$0xff] }
0x24c7   :  { %3417 = vmatmul.mubr.msk.f32.gmra.mrb[28].mxu0 %vm1148_vm3, %v1976_v53 }
0x24c8   :  { %3419 = vmatprep.mubr.msk.f32.mxu0 %vm1148_vm3, %v1977_v0 }
0x24cb   :  { %3420 = vmatmul.mubr.msk.f32.gmra.mrb[30].mxu0 %vm1148_vm3, %v1978_v26 }
0x2592   :  { %v1835_v28 = vpop.f32.mrb[24].mxu0 }
0x2593   :  { %v1839_v29 = vadd.f32 %v1835_v28, %v1140_v27  ;;  %v3401_v30 = vpop.f32.mrb[25].mxu0 }
0x2595   :  { %v3079_v41 = vmul.f32 -1.442695, %v1839_v29 }
0x2596   :  { %v4079_v31 = vpop.f32.mrb[26].mxu0 }
0x2597   :  { %3652 = vpow2.f32 %v3079_v41  ;;  %v2079_v34 = vpop.f32.mrb[27].mxu0  ;;  %v2085_v61 = vadd.f32 %v4079_v31, %v4114_v46 }
0x2598   :  { %v2080_v3 = vadd.f32 %v4114_v46, %v2079_v34 }
0x259a   :  { %v4081_v35 = vpop.f32.mrb[28].mxu0 }
0x259b   :  { %v4083_v36 = vpop.f32.mrb[29].mxu0 }
0x259e   :  { %v4085_v37 = vpop.f32.mrb[30].mxu0 }
0x259f   :  { %v4087_v38 = vpop.f32.mrb[31].mxu0 }
0x25a1   :  { %v3653_v39 = vpop.eup %3652 }
0x25a2   :  { %v1843_v40 = vadd.f32 1.0, %v3653_v39  ;;  %v2090_v39 = vadd.f32 %v4114_v46, %v4083_v36 }
0x25a4   :  { %3654 = vrcp.f32 %v1843_v40 }
0x25ae   :  { %v3655_v33 = vpop.eup %3654 }
0x25af   :  { %v1846_v43 = vmul.f32 2.0, %v3655_v33  ;;  %v1848_v48 = vmul.f32 %v3655_v33, %v1755_v45 }
0x25b1   :  { %v3080_v44 = vadd.f32 -1.0, %v1846_v43 }
0x25b3   :  { %1850 = vrot.lane.b32.xlu0 %v3080_v44, %s3768_s0 }
0x2625   :  { %v1851_v62 = vpop.permute.xlu0 %1850 }
0x2626   :  { %v1853_v47 = vmul.f32 %v3655_v33, %v1851_v62 }
0x2628   :  { %1855 = vrot.lane.b32.xlu1 %v1853_v47, %s3769_s12 }
0x269a   :  { %v1856_v49 = vpop.permute.xlu1 %1855 }
0x269b   :  { %v4091_v50 = vadd.f32 %v1856_v49, %v1848_v48 }
0x269d   :  { %3656 = vtanh.f32 %v4091_v50 }
0x26a7   :  { %v3657_v51 = vpop.eup %3656 }
0x26a8   :  { %1861 = vrot.lane.b32.xlu0 %v3657_v51, %s3767_s27 }
0x271a   :  { %v1862_v54 = vpop.permute.xlu0 %1861 }
0x271b   :  { %v1864_v55 = vmul.f32 %v3655_v33, %v1862_v54 }
0x271d   :  { %1866 = vrot.lane.b32.xlu1 %v1864_v55, %s3770_s13 }
0x278f   :  { %v1867_v56 = vpop.permute.xlu1 %1866 }
0x2790   :  { %1869 = vst.msk [vmem:[#allocation3 + $0x30] sm:$0xff] %vm1148_vm3, %v1867_v56  ;;  %3407 = vmatmul.mubr.msk.f32.vlgmr.msra.gmra.mrb[20].mxu1 %vm1148_vm3, %v1867_v56 }
0x2791   :  { %3426 = vmatpush3.msra.mxu1 %v4095_v52  ;;  %3427 = vmatprep.mubr.msk.f32.mxu1 %vm3764_vm0, %v3765_v1 }
0x2792   :  { %3430 = vmatprep.subr.mxu1 %v3765_v1 }
0x2794   :  { %3428 = vmatmul.mubr.f32.vlgmr.msra.gmra.mrb[22].mxu1 %v3765_v1 }
0x2795   :  { %3431 = vmatpush3.msra.mxu1 %v4095_v52  ;;  %3432 = vmatprep.mubr.msk.f32.mxu1 %vm3764_vm0, %v3765_v1 }
0x2796   :  { %3435 = vmatprep.subr.mxu1 %v3765_v1 }
0x2797   :  { %v1979_v58 = vld [vmem:[#allocation3 + $0x30] sm:$0xff] }
0x2798   :  { %3422 = vmatprep.mubr.msk.f32.mxu0 %vm1148_vm3, %v1979_v58 }
0x2863   :  { %v1938_v63 = vpop.f32.mrb[20].mxu1 }
0x2864   :  { %v4116_v2 = vadd.f32 %v1938_v63, %v1145_v60  ;;  %v3408_v42 = vpop.f32.mrb[21].mxu1 }
0x2866   :  { %v3082_v56 = vmul.f32 -1.442695, %v4116_v2 }
0x2867   :  { %v2186_v6 = vpop.f32.mrb[22].mxu1 }
0x2868   :  { %v2190_v8 = vadd.f32 %v2186_v6, %v2080_v3  ;;  %v3429_v9 = vpop.f32.mrb[23].mxu1 }
0x286a   :  { %v3093_v11 = vmul.f32 -1.442695, %v2190_v8 }
0x286c   :  { %3658 = vpow2.f32 %v3093_v11 }
0x2876   :  { %v3659_v5 = vpop.eup %3658 }
0x2877   :  { %v2194_v13 = vadd.f32 1.0, %v3659_v5 }
0x2879   :  { %3660 = vrcp.f32 %v2194_v13 }
0x2883   :  { %v3661_v14 = vpop.eup %3660 }
0x2884   :  { %v2197_v15 = vmul.f32 2.0, %v3661_v14  ;;  %v2199_v7 = vmul.f32 0.0, %v3661_v14 }
0x2886   :  { %v3094_v10 = vadd.f32 -1.0, %v2197_v15 }
0x2888   :  { %2201 = vrot.lane.b32.xlu0 %v3094_v10, %s3771_s14 }
0x28fa   :  { %v2202_v4 = vpop.permute.xlu0 %2201 }
0x28fb   :  { %v2204_v32 = vmul.f32 %v3661_v14, %v2202_v4 }
0x28fd   :  { %2206 = vrot.lane.b32.xlu1 %v2204_v32, %s3762_s20 }
0x296f   :  { %v2207_v57 = vpop.permute.xlu1 %2206 }
0x2970   :  { %v2209_v16 = vadd.f32 %v2207_v57, %v2199_v7 }
0x2972   :  { %3662 = vtanh.f32 %v2209_v16 }
0x297c   :  { %v3663_v17 = vpop.eup %3662 }
0x297d   :  { %2212 = vrot.lane.b32.xlu0 %v3663_v17, %s3769_s12 }
0x29ef   :  { %v2213_v59 = vpop.permute.xlu0 %2212 }
0x29f0   :  { %v2215_v45 = vmul.f32 %v3661_v14, %v2213_v59 }
0x29f2   :  { %2217 = vrot.lane.b32.xlu1 %v2215_v45, %s3772_s15 }
0x2a64   :  { %v2218_v12 = vpop.permute.xlu1 %2217 }
0x2a65   :  { %3433 = vmatmul.mubr.msk.f32.vlgmr.msra.gmra.mrb[24].mxu1 %vm44_vm1, %v2218_v12 }
0x2a66   :  { %3436 = vmatpush3.msra.mxu1 %v4095_v52  ;;  %3437 = vmatprep.mubr.msk.f32.mxu1 %vm3764_vm0, %v3765_v1 }
0x2a67   :  { %3440 = vmatprep.subr.mxu1 %v3765_v1 }
0x2b38   :  { %v2287_v18 = vpop.f32.mrb[24].mxu1 }
0x2b39   :  { %v2291_v19 = vadd.f32 %v2287_v18, %v2085_v61  ;;  %v3434_v20 = vpop.f32.mrb[25].mxu1 }
0x2b3b   :  { %v3096_v21 = vmul.f32 -1.442695, %v2291_v19 }
0x2b3d   :  { %3664 = vpow2.f32 %v3096_v21 }
0x2b47   :  { %v3665_v22 = vpop.eup %3664 }
0x2b48   :  { %v2295_v23 = vadd.f32 1.0, %v3665_v22 }
0x2b4a   :  { %3666 = vrcp.f32 %v2295_v23 }
0x2b54   :  { %v3667_v24 = vpop.eup %3666 }
0x2b55   :  { %v2298_v25 = vmul.f32 2.0, %v3667_v24  ;;  %v2300_v27 = vmul.f32 %v3667_v24, %v2209_v16  ;;  %v2095_v16 = vadd.f32 %v4081_v35, %v4114_v46 }
0x2b57   :  { %v3097_v53 = vadd.f32 -1.0, %v2298_v25 }
0x2b59   :  { %2302 = vrot.lane.b32.xlu0 %v3097_v53, %s3771_s14 }
0x2bcb   :  { %v2303_v0 = vpop.permute.xlu0 %2302 }
0x2bcc   :  { %v2305_v26 = vmul.f32 %v3667_v24, %v2303_v0 }
0x2bce   :  { %2307 = vrot.lane.b32.xlu1 %v2305_v26, %s3762_s20 }
0x2c40   :  { %v2308_v28 = vpop.permute.xlu1 %2307 }
0x2c41   :  { %v2310_v29 = vadd.f32 %v2308_v28, %v2300_v27 }
0x2c43   :  { %3668 = vtanh.f32 %v2310_v29 }
0x2c4d   :  { %v3669_v30 = vpop.eup %3668 }
0x2c4e   :  { %2313 = vrot.lane.b32.xlu0 %v3669_v30, %s3769_s12 }
0x2cc0   :  { %v2314_v41 = vpop.permute.xlu0 %2313 }
0x2cc1   :  { %v2316_v31 = vmul.f32 %v3667_v24, %v2314_v41  ;;  %v2100_v41 = vadd.f32 %v4114_v46, %v4087_v38 }
0x2cc3   :  { %2318 = vrot.lane.b32.xlu1 %v2316_v31, %s3772_s15 }
0x2d35   :  { %v2319_v34 = vpop.permute.xlu1 %2318 }
0x2d36   :  { %3438 = vmatmul.mubr.msk.f32.vlgmr.msra.gmra.mrb[26].mxu1 %vm44_vm1, %v2319_v34 }
0x2d37   :  { %3441 = vmatpush3.msra.mxu1 %v4095_v52  ;;  %3442 = vmatprep.mubr.msk.f32.mxu1 %vm3764_vm0, %v3765_v1 }
0x2d38   :  { %3450 = vmatprep.subr.mxu1 %v3765_v1 }
0x2e09   :  { %v2388_v40 = vpop.f32.mrb[26].mxu1 }
0x2e0a   :  { %v2392_v33 = vadd.f32 %v2388_v40, %v2090_v39  ;;  %v3439_v43 = vpop.f32.mrb[27].mxu1 }
0x2e0c   :  { %v3099_v44 = vmul.f32 -1.442695, %v2392_v33 }
0x2e0e   :  { %3670 = vpow2.f32 %v3099_v44 }
0x2e18   :  { %v3671_v62 = vpop.eup %3670 }
0x2e19   :  { %v2396_v47 = vadd.f32 1.0, %v3671_v62 }
0x2e1b   :  { %3672 = vrcp.f32 %v2396_v47 }
0x2e1c   :  { %3674 = vpow2.f32 %v3082_v56 }
0x2e25   :  { %v3673_v48 = vpop.eup %3672 }
0x2e26   :  { %v2399_v49 = vmul.f32 2.0, %v3673_v48  ;;  %v3675_v36 = vpop.eup %3674  ;;  %v2401_v60 = vmul.f32 %v3673_v48, %v2310_v29 }
0x2e27   :  { %v1946_v58 = vadd.f32 1.0, %v3675_v36 }
0x2e28   :  { %v3100_v51 = vadd.f32 -1.0, %v2399_v49 }
0x2e29   :  { %3676 = vrcp.f32 %v1946_v58 }
0x2e2a   :  { %2403 = vrot.lane.b32.xlu0 %v3100_v51, %s3771_s14 }
0x2e33   :  { %v3677_v3 = vpop.eup %3676 }
0x2e34   :  { %v1949_v6 = vmul.f32 2.0, %v3677_v3  ;;  %v1951_v15 = vmul.f32 %v3677_v3, %v4091_v50 }
0x2e36   :  { %v3083_v9 = vadd.f32 -1.0, %v1949_v6 }
0x2e9c   :  { %v2404_v54 = vpop.permute.xlu0 %2403 }
0x2e9d   :  { %v2406_v55 = vmul.f32 %v3673_v48, %v2404_v54 }
0x2e9f   :  { %2408 = vrot.lane.b32.xlu1 %v2406_v55, %s3762_s20 }
0x2f11   :  { %v2409_v63 = vpop.permute.xlu1 %2408 }
0x2f12   :  { %v2411_v42 = vadd.f32 %v2409_v63, %v2401_v60  ;;  %v2105_v60 = vadd.f32 %v4085_v37, %v4114_v46 }
0x2f14   :  { %3678 = vtanh.f32 %v2411_v42 }
0x2f1e   :  { %v3679_v8 = vpop.eup %3678 }
0x2f1f   :  { %2414 = vrot.lane.b32.xlu0 %v3679_v8, %s3769_s12 }
0x2f23   :  { %1953 = vrot.lane.b32.xlu0 %v3083_v9, %s3768_s0 }
0x2f91   :  { %v2415_v11 = vpop.permute.xlu0 %2414 }
0x2f92   :  { %v2417_v5 = vmul.f32 %v3673_v48, %v2415_v11 }
0x2f94   :  { %2419 = vrot.lane.b32.xlu1 %v2417_v5, %s3772_s15 }
0x2f95   :  { %v1954_v2 = vpop.permute.xlu0 %1953 }
0x2f96   :  { %v1956_v13 = vmul.f32 %v3677_v3, %v1954_v2 }
0x2f98   :  { %1958 = vrot.lane.b32.xlu0 %v1956_v13, %s3769_s12 }
0x3006   :  { %v2420_v14 = vpop.permute.xlu1 %2419 }
0x3007   :  { %3443 = vmatmul.mubr.msk.f32.vlgmr.msra.gmra.mrb[28].mxu1 %vm44_vm1, %v2420_v14 }
0x3008   :  { %3451 = vmatpush3.msra.mxu1 %v4095_v52  ;;  %3452 = vmatprep.mubr.msk.f32.mxu1 %vm3764_vm0, %v3765_v1 }
0x3009   :  { %3460 = vmatprep.subr.mxu1 %v3765_v1 }
0x300a   :  { %v1959_v10 = vpop.permute.xlu0 %1958 }
0x300b   :  { %v1961_v4 = vadd.f32 %v1959_v10, %v1951_v15 }
0x300d   :  { %3680 = vtanh.f32 %v1961_v4 }
0x3017   :  { %v3681_v32 = vpop.eup %3680 }
0x3018   :  { %1964 = vrot.lane.b32.xlu0 %v3681_v32, %s3767_s27 }
0x308a   :  { %v1965_v7 = vpop.permute.xlu0 %1964 }
0x308b   :  { %v1967_v57 = vmul.f32 %v3677_v3, %v1965_v7 }
0x308d   :  { %1969 = vrot.lane.b32.xlu0 %v1967_v57, %s3770_s13 }
0x30da   :  { %v2489_v17 = vpop.f32.mrb[28].mxu1 }
0x30db   :  { %v2493_v59 = vadd.f32 %v2489_v17, %v2095_v16  ;;  %v3444_v45 = vpop.f32.mrb[29].mxu1 }
0x30dd   :  { %v3102_v12 = vmul.f32 -1.442695, %v2493_v59 }
0x30df   :  { %3682 = vpow2.f32 %v3102_v12 }
0x30e9   :  { %v3683_v50 = vpop.eup %3682 }
0x30ea   :  { %v2497_v61 = vadd.f32 1.0, %v3683_v50 }
0x30ec   :  { %3684 = vrcp.f32 %v2497_v61 }
0x30f6   :  { %v3685_v18 = vpop.eup %3684 }
0x30f7   :  { %v2500_v19 = vmul.f32 2.0, %v3685_v18  ;;  %v2502_v53 = vmul.f32 %v3685_v18, %v2411_v42 }
0x30f9   :  { %v3103_v20 = vadd.f32 -1.0, %v2500_v19 }
0x30fb   :  { %2504 = vrot.lane.b32.xlu1 %v3103_v20, %s3771_s14 }
0x30ff   :  { %v1970_v21 = vpop.permute.xlu0 %1969 }
0x3100   :  { %1972 = vst.msk [vmem:[#allocation3 + $0x38] sm:$0xff] %vm1148_vm3, %v1970_v21 }
0x3107   :  { %v1980_v22 = vld [vmem:[#allocation3 + $0x38] sm:$0xff] }
0x3108   :  { %3423 = vmatmul.mubr.msk.f32.gmra.mrb[32].mxu0 %vm1148_vm3, %v1980_v22 }
0x3109   :  { %3447 = vmatprep.mubr.msk.f32.mxu0 %vm3764_vm0, %v3765_v1 }
0x316d   :  { %v2505_v35 = vpop.permute.xlu1 %2504 }
0x316e   :  { %v2507_v23 = vmul.f32 %v3685_v18, %v2505_v35 }
0x3170   :  { %2509 = vrot.lane.b32.xlu1 %v2507_v23, %s3762_s20 }
0x31db   :  { %v4164_v24 = vpop.f32.mrb[32].mxu0 }
0x31dc   :  { %v4166_v25 = vpop.f32.mrb[33].mxu0 }
0x31dd   :  { %v2110_v57 = vadd.f32 %v4114_v46, %v4166_v25 }
0x31e2   :  { %v2510_v0 = vpop.permute.xlu1 %2509 }
0x31e3   :  { %v2512_v26 = vadd.f32 %v2510_v0, %v2502_v53 }
0x31e5   :  { %3686 = vtanh.f32 %v2512_v26 }
0x31ef   :  { %v3687_v27 = vpop.eup %3686 }
0x31f0   :  { %2515 = vrot.lane.b32.xlu1 %v3687_v27, %s3769_s12 }
0x3262   :  { %v2516_v28 = vpop.permute.xlu1 %2515 }
0x3263   :  { %v2518_v29 = vmul.f32 %v3685_v18, %v2516_v28 }
0x3265   :  { %2520 = vrot.lane.b32.xlu1 %v2518_v29, %s3772_s15 }
0x32d7   :  { %v2521_v30 = vpop.permute.xlu1 %2520 }
0x32d8   :  { %3448 = vmatmul.mubr.msk.f32.vlgmr.msra.gmra.mrb[34].mxu0 %vm44_vm1, %v2521_v30 }
0x32d9   :  { %3456 = vmatpush3.msra.mxu0 %v4095_v52  ;;  %3457 = vmatprep.mubr.msk.f32.mxu0 %vm3764_vm0, %v3765_v1 }
0x32da   :  { %3465 = vmatprep.subr.mxu0 %v3765_v1 }
0x33ab   :  { %v2590_v31 = vpop.f32.mrb[34].mxu0 }
0x33ac   :  { %v2594_v34 = vadd.f32 %v2590_v31, %v2100_v41  ;;  %v3449_v39 = vpop.f32.mrb[35].mxu0 }
0x33ae   :  { %v3105_v40 = vmul.f32 -1.442695, %v2594_v34 }
0x33b0   :  { %3688 = vpow2.f32 %v3105_v40 }
0x33ba   :  { %v3689_v33 = vpop.eup %3688 }
0x33bb   :  { %v2598_v43 = vadd.f32 1.0, %v3689_v33 }
0x33bd   :  { %3690 = vrcp.f32 %v2598_v43 }
0x33c7   :  { %v3691_v44 = vpop.eup %3690 }
0x33c8   :  { %v2601_v62 = vmul.f32 2.0, %v3691_v44  ;;  %v2603_v51 = vmul.f32 %v3691_v44, %v2512_v26  ;;  %v2115_v26 = vadd.f32 %v4164_v24, %v4114_v46  ;;  %v2923_v24 = vld [vmem:[#allocation4 + $0x88] sm:$0xff] }
0x33ca   :  { %v3106_v47 = vadd.f32 -1.0, %v2601_v62 }
0x33cc   :  { %2605 = vrot.lane.b32.xlu0 %v3106_v47, %s3771_s14 }
0x343e   :  { %v2606_v48 = vpop.permute.xlu0 %2605 }
0x343f   :  { %v2608_v49 = vmul.f32 %v3691_v44, %v2606_v48 }
0x3441   :  { %2610 = vrot.lane.b32.xlu1 %v2608_v49, %s3762_s20 }
0x34b3   :  { %v2611_v54 = vpop.permute.xlu1 %2610 }
0x34b4   :  { %v2613_v38 = vadd.f32 %v2611_v54, %v2603_v51  ;;  %v3116_v54 = vld [vmem:[#allocation4 + $0x90] ss:$0 sm:$0xff] }
0x34b6   :  { %3692 = vtanh.f32 %v2613_v38 }
0x34c0   :  { %v3693_v55 = vpop.eup %3692 }
0x34c1   :  { %2616 = vrot.lane.b32.xlu0 %v3693_v55, %s3769_s12 }
0x3533   :  { %v2617_v56 = vpop.permute.xlu0 %2616 }
0x3534   :  { %v2619_v36 = vmul.f32 %v3691_v44, %v2617_v56 }
0x3536   :  { %2621 = vrot.lane.b32.xlu1 %v2619_v36, %s3772_s15 }
0x35a8   :  { %v2622_v58 = vpop.permute.xlu1 %2621 }
0x35a9   :  { %3453 = vmatmul.mubr.msk.f32.vlgmr.msra.gmra.mrb[30].mxu1 %vm44_vm1, %v2622_v58 }
0x35aa   :  { %3461 = vmatpush3.msra.mxu1 %v4095_v52  ;;  %3462 = vmatprep.mubr.msk.f32.mxu1 %vm3764_vm0, %v3765_v1 }
0x367c   :  { %v2691_v63 = vpop.f32.mrb[30].mxu1 }
0x367d   :  { %v2695_v42 = vadd.f32 %v2691_v63, %v2105_v60  ;;  %v3454_v3 = vpop.f32.mrb[31].mxu1 }
0x367f   :  { %v3108_v6 = vmul.f32 -1.442695, %v2695_v42 }
0x3681   :  { %3694 = vpow2.f32 %v3108_v6 }
0x368b   :  { %v3695_v8 = vpop.eup %3694 }
0x368c   :  { %v2699_v9 = vadd.f32 1.0, %v3695_v8 }
0x368e   :  { %3696 = vrcp.f32 %v2699_v9 }
0x3698   :  { %v3697_v11 = vpop.eup %3696 }
0x3699   :  { %v2702_v5 = vmul.f32 2.0, %v3697_v11  ;;  %v2704_v14 = vmul.f32 %v3697_v11, %v2613_v38 }
0x369b   :  { %v3109_v2 = vadd.f32 -1.0, %v2702_v5 }
0x369d   :  { %2706 = vrot.lane.b32.xlu0 %v3109_v2, %s3771_s14 }
0x370f   :  { %v2707_v52 = vpop.permute.xlu0 %2706 }
0x3710   :  { %v2709_v13 = vmul.f32 %v3697_v11, %v2707_v52 }
0x3712   :  { %2711 = vrot.lane.b32.xlu1 %v2709_v13, %s3762_s20 }
0x3784   :  { %v2712_v15 = vpop.permute.xlu1 %2711 }
0x3785   :  { %v2714_v37 = vadd.f32 %v2712_v15, %v2704_v14 }
0x3787   :  { %3698 = vtanh.f32 %v2714_v37 }
0x3791   :  { %v3699_v10 = vpop.eup %3698 }
0x3792   :  { %2717 = vrot.lane.b32.xlu0 %v3699_v10, %s3769_s12 }
0x3804   :  { %v2718_v4 = vpop.permute.xlu0 %2717 }
0x3805   :  { %v2720_v32 = vmul.f32 %v3697_v11, %v2718_v4 }
0x3807   :  { %2722 = vrot.lane.b32.xlu1 %v2720_v32, %s3772_s15 }
0x3879   :  { %v2723_v7 = vpop.permute.xlu1 %2722 }
0x387a   :  { %3458 = vmatmul.mubr.msk.f32.vlgmr.msra.gmra.mrb[36].mxu0 %vm44_vm1, %v2723_v7 }
0x387b   :  { %3467 = vmatprep.mubr.msk.f32.mxu0 %vm3764_vm0, %v3765_v1  ;;  %3466 = vmatpush3.msra.mxu0 %v2923_v24 }
0x394d   :  { %v2792_v16 = vpop.f32.mrb[36].mxu0 }
0x394e   :  { %v2796_v17 = vadd.f32 %v2792_v16, %v2110_v57  ;;  %v3459_v59 = vpop.f32.mrb[37].mxu0 }
0x3950   :  { %v3111_v45 = vmul.f32 -1.442695, %v2796_v17 }
0x3952   :  { %3700 = vpow2.f32 %v3111_v45 }
0x395c   :  { %v3701_v12 = vpop.eup %3700 }
0x395d   :  { %v2800_v50 = vadd.f32 1.0, %v3701_v12 }
0x395f   :  { %3702 = vrcp.f32 %v2800_v50 }
0x3969   :  { %v3703_v61 = vpop.eup %3702 }
0x396a   :  { %v2803_v18 = vmul.f32 2.0, %v3703_v61  ;;  %v2805_v1 = vmul.f32 %v3703_v61, %v2714_v37 }
0x396c   :  { %v3112_v19 = vadd.f32 -1.0, %v2803_v18 }
0x396e   :  { %2807 = vrot.lane.b32.xlu0 %v3112_v19, %s3771_s14 }
0x39e0   :  { %v2808_v20 = vpop.permute.xlu0 %2807 }
0x39e1   :  { %v2810_v21 = vmul.f32 %v3703_v61, %v2808_v20 }
0x39e3   :  { %2812 = vrot.lane.b32.xlu1 %v2810_v21, %s3762_s20 }
0x3a55   :  { %v2813_v22 = vpop.permute.xlu1 %2812 }
0x3a56   :  { %v2815_v35 = vadd.f32 %v2813_v22, %v2805_v1 }
0x3a58   :  { %3704 = vtanh.f32 %v2815_v35 }
0x3a62   :  { %v3705_v23 = vpop.eup %3704 }
0x3a63   :  { %2818 = vrot.lane.b32.xlu0 %v3705_v23, %s3769_s12 }
0x3ad5   :  { %v2819_v25 = vpop.permute.xlu0 %2818 }
0x3ad6   :  { %v2821_v53 = vmul.f32 %v3703_v61, %v2819_v25 }
0x3ad8   :  { %2823 = vrot.lane.b32.xlu1 %v2821_v53, %s3772_s15 }
0x3b4a   :  { %v2824_v0 = vpop.permute.xlu1 %2823 }
0x3b4b   :  { %3463 = vmatmul.mubr.msk.f32.vlgmr.msra.gmra.mrb[32].mxu1 %vm44_vm1, %v2824_v0 }
0x3c1e   :  { %v2893_v27 = vpop.f32.mrb[32].mxu1 }
0x3c1f   :  { %v2897_v28 = vadd.f32 %v2893_v27, %v2115_v26  ;;  %v3464_v29 = vpop.f32.mrb[33].mxu1 }
0x3c21   :  { %v3114_v30 = vmul.f32 -1.442695, %v2897_v28 }
0x3c23   :  { %3706 = vpow2.f32 %v3114_v30 }
0x3c2d   :  { %v3707_v41 = vpop.eup %3706 }
0x3c2e   :  { %v2901_v31 = vadd.f32 1.0, %v3707_v41 }
0x3c30   :  { %3708 = vrcp.f32 %v2901_v31 }
0x3c3a   :  { %v3709_v34 = vpop.eup %3708 }
0x3c3b   :  { %v2904_v39 = vmul.f32 2.0, %v3709_v34  ;;  %v2906_v44 = vmul.f32 %v3709_v34, %v2815_v35 }
0x3c3d   :  { %v3115_v40 = vadd.f32 -1.0, %v2904_v39 }
0x3c3f   :  { %2908 = vrot.lane.b32.xlu0 %v3115_v40, %s3771_s14 }
0x3cb1   :  { %v2909_v33 = vpop.permute.xlu0 %2908 }
0x3cb2   :  { %v2911_v43 = vmul.f32 %v3709_v34, %v2909_v33 }
0x3cb4   :  { %2913 = vrot.lane.b32.xlu1 %v2911_v43, %s3762_s20 }
0x3d26   :  { %v2914_v62 = vpop.permute.xlu1 %2913 }
0x3d27   :  { %v2916_v46 = vadd.f32 %v2914_v62, %v2906_v44 }
0x3d29   :  { %3710 = vtanh.f32 %v2916_v46 }
0x3d33   :  { %v3711_v47 = vpop.eup %3710 }
0x3d34   :  { %2919 = vrot.lane.b32.xlu0 %v3711_v47, %s3769_s12 }
0x3da6   :  { %v2920_v48 = vpop.permute.xlu0 %2919 }
0x3da7   :  { %v2922_v49 = vmul.f32 %v3709_v34, %v2920_v48 }
0x3da9   :  { %2930 = vrot.lane.b32.xlu1 %v2922_v49, %s3772_s15 }
0x3e1b   :  { %v2931_v51 = vpop.permute.xlu1 %2930 }
0x3e1c   :  { %3468 = vmatmul.mubr.msk.f32.vlgmr.msra.gmra.mrb[38].mxu0 %vm44_vm1, %v2931_v51 }
0x3eef   :  { %v3000_v38 = vpop.f32.mrb[38].mxu0 }
0x3ef0   :  { %v3001_v55 = vadd.f32 %v3116_v54, %v3000_v38  ;;  %v3469_v56 = vpop.f32.mrb[39].mxu0 }
0x3ef2   :  { %3004 = vst [vmem:[#allocation7] sm:$0xff] %v3001_v55 }
0x3ef3   :  { %3745 = shalt.err (!%p3742_p12)
}
0x3ef4   :  { %s3746_s21 = scalar_lea.hbm %s4222_s2, 128 }
0x3ef5   :  { %p3747_p13 = scmp.ne.s32.totalorder %s4222_s2, %s3746_s21  ;;  %p3750_p0 = scmp.lt.u32.totalorder %s3746_s21, %s4222_s2 }
0x3ef7   :  { %p3752_p1 = pnand %p3750_p0, %p3747_p13 }
0x3ef9   :  { %3755 = shalt.err (!%p3752_p1)
}
0x3efa   :  { %3014 = dma.vmem_to_hbm [thread:$0]  %s3012_s17, 128, %s4222_s2, [#allocation6]  }
0x3efb   :  { %3758 = dma.done.wait [#allocation6], 128  }
0x3efc   :  { %3759 = vsyncadd [#allocation6], 4294967168 }
0x3efd   :  { %3018 = vsyncpa [#allocation5], 1 }
0x3efe   :  { %3019 = vsyncpa [#allocation6], 1 }

</bundles_post_ra>
